<compile_context>
chip_gen: v5e
topology: v5e:2x2
jax: 0.10.0
libtpu: 0.0.40
codegen_flags: <defaults>
</compile_context>

<pallas_src>
import functools
import numpy as np
import jax
import jax.numpy as jnp
from jax.experimental import pallas as pl
from jax.experimental.pallas import tpu as pltpu


def _lstm_fc_kernel(x_ref, wih_ref, whh_ref, b_ref, fcw_ref, fcb_ref, out_ref,
                    *, num_layers, hidden, seq_len, batch_pad):
    """Whole LSTM stack + final linear, single grid point (all tiles in VMEM).

    x_ref   : (T*Bp, F)      time-major flattened input sequence (f32), Bp = 8
    wih_ref : (L, F, 4H)     input->gates weights (transposed, gate order i,f,o,g)
    whh_ref : (L, H, 4H)     hidden->gates weights (transposed, gate order i,f,o,g)
    b_ref   : (L, 1, 4H)     combined bias (b_ih + b_hh), gate order i,f,o,g
    fcw_ref : (H, 128)       fc weight transposed, zero-padded on lanes (3 -> 128)
    fcb_ref : (1, 128)       fc bias, zero-padded
    out_ref : (Bp, 128)      padded logits (first 3 lanes valid)
    """
    T, B, H = seq_len, batch_pad, hidden

    src = x_ref[...]                                     # (T*B, F) f32, layer-0 input
    h_last = None
    for layer in range(num_layers):
        # Per-layer weights loaded once, cast to bf16 once (single-pass MXU).
        wih = wih_ref[layer].astype(jnp.bfloat16)        # (F_or_H, 4H)
        whh = whh_ref[layer].astype(jnp.bfloat16)        # (H, 4H)
        b = b_ref[layer]                                 # (1, 4H) f32

        # Hoisted non-recurrent projection: one batched matmul per layer,
        # off the recurrent critical path. f32 accumulation on the MXU.
        x_proj = jnp.dot(src.astype(jnp.bfloat16), wih,
                         preferred_element_type=jnp.float32) + b    # (T*B, 4H)

        h = jnp.zeros((B, H), jnp.float32)
        c = jnp.zeros((B, H), jnp.float32)
        hs = []
        last_layer = layer == num_layers - 1
        for t in range(T):
            # Single small (8,32)@(32,128) matmul per serial timestep; the
            # static row slice of x_proj is 8-sublane aligned (B == 8).
            gates = (jnp.dot(h.astype(jnp.bfloat16), whh,
                             preferred_element_type=jnp.float32)
                     + x_proj[t * B:(t + 1) * B])                    # (8, 128) vreg
            # Gate order [i, f, o, g]: sigmoid over the first 3H lanes only,
            # tanh over the last H lanes only (no discarded EUP work).
            sig = jax.nn.sigmoid(gates[:, :3 * H])
            g_g = jnp.tanh(gates[:, 3 * H:])
            i_g = sig[:, 0 * H:1 * H]
            f_g = sig[:, 1 * H:2 * H]
            o_g = sig[:, 2 * H:3 * H]
            c = f_g * c + i_g * g_g
            h = o_g * jnp.tanh(c)
            if not last_layer:
                hs.append(h)                 # next layer's input, stays in vregs
        if not last_layer:
            src = jnp.concatenate(hs, axis=0)            # (T*B, H)
        h_last = h

    # Final linear on the last time-step hidden state of the last layer.
    # Lane-dense (Bp,128) output -> unmasked full-lane stores.
    out_ref[...] = (
        jnp.dot(h_last.astype(jnp.bfloat16), fcw_ref[...].astype(jnp.bfloat16),
                preferred_element_type=jnp.float32)
        + fcb_ref[...]
    ).astype(out_ref.dtype)


def vanilla_lstm_forward(x_btf, params, *, hidden, num_layers):
    B, T, F = x_btf.shape
    assert F == hidden, "module's fc(in_features=featureslen) implies F == hidden"
    H = hidden
    B_PAD = 8          # one f32 sublane group
    OUT_PAD = 128
    # TODO(synk): for B > 8 tile the batch over a parallel grid axis instead.
    assert B <= B_PAD

    # Zero-pad batch to a full sublane group (padded rows are independent and
    # never read back), then batch_first (Bp,T,F) -> time-major (T*Bp, F).
    x = x_btf.astype(jnp.float32)
    if B < B_PAD:
        x = jnp.pad(x, ((0, B_PAD - B), (0, 0), (0, 0)))
    x_flat = jnp.transpose(x, (1, 0, 2)).reshape(T * B_PAD, F)

    kernel = functools.partial(_lstm_fc_kernel, num_layers=num_layers,
                               hidden=H, seq_len=T, batch_pad=B_PAD)
    out_pad = pl.pallas_call(
        kernel,
        out_shape=jax.ShapeDtypeStruct((B_PAD, OUT_PAD), jnp.float32),
        in_specs=[pl.BlockSpec(memory_space=pltpu.MemorySpace.VMEM)] * 6,
        out_specs=pl.BlockSpec(memory_space=pltpu.MemorySpace.VMEM),
    )(x_flat, params["wih_k"], params["whh_k"], params["bias_k"],
      params["fcw_pad"], params["fcb_pad"])

    return out_pad[:B, :3]                                          # (B, 3) logits


def init_params(key, featureslen, hidden, num_layers):
    """Deterministic init matching PyTorch parameter shapes (U(-1/sqrt(H), 1/sqrt(H))).

    Produces both canonical-order [i,f,g,o] weights (for the pure-JAX reference)
    and kernel-order [i,f,o,g] weights (sigmoid lanes contiguous, tanh last).
    """
    F, H = featureslen, hidden
    k = 1.0 / np.sqrt(H)
    keys = jax.random.split(key, num_layers * 4 + 2)
    wih_list, whh_list, b_list = [], [], []
    idx = 0
    for layer in range(num_layers):
        in_sz = F if layer == 0 else H
        w_ih = jax.random.uniform(keys[idx], (4 * H, in_sz), minval=-k, maxval=k); idx += 1
        w_hh = jax.random.uniform(keys[idx], (4 * H, H), minval=-k, maxval=k); idx += 1
        b_ih = jax.random.uniform(keys[idx], (4 * H,), minval=-k, maxval=k); idx += 1
        b_hh = jax.random.uniform(keys[idx], (4 * H,), minval=-k, maxval=k); idx += 1
        wih_list.append(w_ih.T)                 # (in, 4H), canonical gate order [i,f,g,o]
        whh_list.append(w_hh.T)                 # (H, 4H)
        b_list.append((b_ih + b_hh)[None, :])   # (1, 4H)

    kf = 1.0 / np.sqrt(F)
    fc_w = jax.random.uniform(keys[idx], (3, F), minval=-kf, maxval=kf); idx += 1
    fc_b = jax.random.uniform(keys[idx], (3,), minval=-kf, maxval=kf)

    wih = jnp.stack(wih_list).astype(jnp.float32)     # (L, F, 4H) canonical
    whh = jnp.stack(whh_list).astype(jnp.float32)     # (L, H, 4H) canonical
    bias = jnp.stack(b_list).astype(jnp.float32)      # (L, 1, 4H) canonical

    def to_ifog(a):
        """Permute last axis from canonical [i,f,g,o] to kernel order [i,f,o,g]."""
        i, f, g, o = (a[..., n * H:(n + 1) * H] for n in range(4))
        return jnp.concatenate([i, f, o, g], axis=-1)

    fcw_pad = jnp.zeros((H, 128), jnp.float32).at[:, :3].set(fc_w.T)
    fcb_pad = jnp.zeros((1, 128), jnp.float32).at[0, :3].set(fc_b)

    return dict(
        wih=wih, whh=whh, bias=bias,                                # reference
        wih_k=to_ifog(wih), whh_k=to_ifog(whh), bias_k=to_ifog(bias),  # kernel
        fcw_pad=fcw_pad, fcb_pad=fcb_pad,
        fc_w=fc_w.astype(jnp.float32), fc_b=fc_b.astype(jnp.float32),
    )


def reference_forward(x_btf, params, *, hidden, num_layers):
    """Pure-JAX reference of the PyTorch forward (no dropout, canonical gate order)."""
    B, T, F = x_btf.shape
    H = hidden
    seq = x_btf.astype(jnp.float32)
    for layer in range(num_layers):
        h = jnp.zeros((B, H), jnp.float32)
        c = jnp.zeros((B, H), jnp.float32)
        outs = []
        for t in range(T):
            gates = (seq[:, t, :] @ params["wih"][layer]
                     + h @ params["whh"][layer] + params["bias"][layer])
            i_g = jax.nn.sigmoid(gates[:, :H])
            f_g = jax.nn.sigmoid(gates[:, H:2 * H])
            g_g = jnp.tanh(gates[:, 2 * H:3 * H])
            o_g = jax.nn.sigmoid(gates[:, 3 * H:])
            c = f_g * c + i_g * g_g
            h = o_g * jnp.tanh(c)
            outs.append(h)
        seq = jnp.stack(outs, axis=1)
    last = seq[:, -1, :]
    return last @ params["fc_w"].T + params["fc_b"]


if __name__ == "__main__":
    BATCH, SEQ = 2, 8
    FEATURES = 32          # len(features)
    HIDDEN = 32            # must equal FEATURES (see note above)
    LAYERS = 2

    key = jax.random.PRNGKey(0)
    kx, kp = jax.random.split(key)
    x = jax.random.normal(kx, (BATCH, SEQ, FEATURES), dtype=jnp.float32)
    params = init_params(kp, FEATURES, HIDDEN, LAYERS)

    out = vanilla_lstm_forward(x, params, hidden=HIDDEN, num_layers=LAYERS)
    out = jax.block_until_ready(out)

    ref = reference_forward(x, params, hidden=HIDDEN, num_layers=LAYERS)
    # Kernel pins single-pass bf16 MXU inputs (f32 accumulation); reference uses
    # default-precision f32 dots, so allow bf16-level drift over the 16-step chain.
    np.testing.assert_allclose(np.asarray(out), np.asarray(ref),
                               rtol=2e-3, atol=2e-3)
    assert out.shape == (BATCH, 3)
    print("KERNEL_OK")
</pallas_src>

<mosaic_0001>
module attributes {stable_mosaic.version = 11 : i64} {
  func.func @_lstm_fc_kernel(%arg0: memref<64x32xf32, #tpu.memory_space<vmem>>, %arg1: memref<2x32x128xf32, #tpu.memory_space<vmem>>, %arg2: memref<2x32x128xf32, #tpu.memory_space<vmem>>, %arg3: memref<2x1x128xf32, #tpu.memory_space<vmem>>, %arg4: memref<32x128xf32, #tpu.memory_space<vmem>>, %arg5: memref<1x128xf32, #tpu.memory_space<vmem>>, %arg6: memref<8x128xf32, #tpu.memory_space<vmem>>) attributes {dimension_semantics = [], scalar_prefetch = 0 : i64, scratch_operands = 0 : i64, tpu.core_type = #tpu.core_type<tc>} {
    %c0 = arith.constant 0 : index
    %c0_0 = arith.constant 0 : index
    %0 = vector.load %arg0[%c0, %c0_0] : memref<64x32xf32, #tpu.memory_space<vmem>>, vector<64x32xf32>
    %c0_1 = arith.constant 0 : index
    %c0_2 = arith.constant 0 : index
    %c0_3 = arith.constant 0 : index
    %1 = vector.load %arg1[%c0_1, %c0_2, %c0_3] : memref<2x32x128xf32, #tpu.memory_space<vmem>>, vector<1x32x128xf32>
    %2 = vector.shape_cast %1 : vector<1x32x128xf32> to vector<32x128xf32>
    %3 = arith.truncf %2 : vector<32x128xf32> to vector<32x128xbf16>
    %c0_4 = arith.constant 0 : index
    %c0_5 = arith.constant 0 : index
    %c0_6 = arith.constant 0 : index
    %4 = vector.load %arg2[%c0_4, %c0_5, %c0_6] : memref<2x32x128xf32, #tpu.memory_space<vmem>>, vector<1x32x128xf32>
    %5 = vector.shape_cast %4 : vector<1x32x128xf32> to vector<32x128xf32>
    %6 = arith.truncf %5 : vector<32x128xf32> to vector<32x128xbf16>
    %c0_7 = arith.constant 0 : index
    %c0_8 = arith.constant 0 : index
    %c0_9 = arith.constant 0 : index
    %7 = vector.load %arg3[%c0_7, %c0_8, %c0_9] : memref<2x1x128xf32, #tpu.memory_space<vmem>>, vector<1x1x128xf32>
    %8 = vector.shape_cast %7 : vector<1x1x128xf32> to vector<1x128xf32>
    %9 = arith.truncf %0 : vector<64x32xf32> to vector<64x32xbf16>
    %cst = arith.constant dense<0.000000e+00> : vector<64x128xf32>
    %10 = tpu.matmul %9, %3, %cst {dimension_numbers = #tpu.dot_dimension_numbers<[1], [0], [0], [1], [0, 0, 1, 1], [], []>} : vector<64x32xbf16>, vector<32x128xbf16>, vector<64x128xf32> -> vector<64x128xf32>
    %11 = vector.broadcast %8 : vector<1x128xf32> to vector<64x128xf32>
    %12 = arith.addf %10, %11 : vector<64x128xf32>
    %cst_10 = arith.constant 0.000000e+00 : f32
    %13 = vector.broadcast %cst_10 : f32 to vector<8x32xf32>
    %cst_11 = arith.constant 0.000000e+00 : f32
    %14 = vector.broadcast %cst_11 : f32 to vector<8x32xf32>
    %15 = arith.truncf %13 : vector<8x32xf32> to vector<8x32xbf16>
    %cst_12 = arith.constant dense<0.000000e+00> : vector<8x128xf32>
    %16 = tpu.matmul %15, %6, %cst_12 {dimension_numbers = #tpu.dot_dimension_numbers<[1], [0], [0], [1], [0, 0, 1, 1], [], []>} : vector<8x32xbf16>, vector<32x128xbf16>, vector<8x128xf32> -> vector<8x128xf32>
    %17 = vector.extract_strided_slice %12 {offsets = [0, 0], sizes = [8, 128], strides = [1, 1]} : vector<64x128xf32> to vector<8x128xf32>
    %18 = arith.addf %16, %17 : vector<8x128xf32>
    %19 = vector.extract_strided_slice %18 {offsets = [0, 0], sizes = [8, 96], strides = [1, 1]} : vector<8x128xf32> to vector<8x96xf32>
    %20 = arith.negf %19 : vector<8x96xf32>
    %21 = math.exp %20 : vector<8x96xf32>
    %cst_13 = arith.constant 1.000000e+00 : f32
    %22 = vector.broadcast %cst_13 : f32 to vector<8x96xf32>
    %23 = arith.addf %22, %21 : vector<8x96xf32>
    %24 = arith.divf %22, %23 : vector<8x96xf32>
    %25 = vector.extract_strided_slice %18 {offsets = [0, 96], sizes = [8, 32], strides = [1, 1]} : vector<8x128xf32> to vector<8x32xf32>
    %26 = math.tanh %25 : vector<8x32xf32>
    %27 = vector.extract_strided_slice %24 {offsets = [0, 0], sizes = [8, 32], strides = [1, 1]} : vector<8x96xf32> to vector<8x32xf32>
    %28 = vector.extract_strided_slice %24 {offsets = [0, 32], sizes = [8, 32], strides = [1, 1]} : vector<8x96xf32> to vector<8x32xf32>
    %29 = vector.extract_strided_slice %24 {offsets = [0, 64], sizes = [8, 32], strides = [1, 1]} : vector<8x96xf32> to vector<8x32xf32>
    %30 = arith.mulf %28, %14 : vector<8x32xf32>
    %31 = arith.mulf %27, %26 : vector<8x32xf32>
    %32 = arith.addf %30, %31 : vector<8x32xf32>
    %33 = math.tanh %32 : vector<8x32xf32>
    %34 = arith.mulf %29, %33 : vector<8x32xf32>
    %35 = arith.truncf %34 : vector<8x32xf32> to vector<8x32xbf16>
    %cst_14 = arith.constant dense<0.000000e+00> : vector<8x128xf32>
    %36 = tpu.matmul %35, %6, %cst_14 {dimension_numbers = #tpu.dot_dimension_numbers<[1], [0], [0], [1], [0, 0, 1, 1], [], []>} : vector<8x32xbf16>, vector<32x128xbf16>, vector<8x128xf32> -> vector<8x128xf32>
    %37 = vector.extract_strided_slice %12 {offsets = [8, 0], sizes = [8, 128], strides = [1, 1]} : vector<64x128xf32> to vector<8x128xf32>
    %38 = arith.addf %36, %37 : vector<8x128xf32>
    %39 = vector.extract_strided_slice %38 {offsets = [0, 0], sizes = [8, 96], strides = [1, 1]} : vector<8x128xf32> to vector<8x96xf32>
    %40 = arith.negf %39 : vector<8x96xf32>
    %41 = math.exp %40 : vector<8x96xf32>
    %cst_15 = arith.constant 1.000000e+00 : f32
    %42 = vector.broadcast %cst_15 : f32 to vector<8x96xf32>
    %43 = arith.addf %42, %41 : vector<8x96xf32>
    %44 = arith.divf %42, %43 : vector<8x96xf32>
    %45 = vector.extract_strided_slice %38 {offsets = [0, 96], sizes = [8, 32], strides = [1, 1]} : vector<8x128xf32> to vector<8x32xf32>
    %46 = math.tanh %45 : vector<8x32xf32>
    %47 = vector.extract_strided_slice %44 {offsets = [0, 0], sizes = [8, 32], strides = [1, 1]} : vector<8x96xf32> to vector<8x32xf32>
    %48 = vector.extract_strided_slice %44 {offsets = [0, 32], sizes = [8, 32], strides = [1, 1]} : vector<8x96xf32> to vector<8x32xf32>
    %49 = vector.extract_strided_slice %44 {offsets = [0, 64], sizes = [8, 32], strides = [1, 1]} : vector<8x96xf32> to vector<8x32xf32>
    %50 = arith.mulf %48, %32 : vector<8x32xf32>
    %51 = arith.mulf %47, %46 : vector<8x32xf32>
    %52 = arith.addf %50, %51 : vector<8x32xf32>
    %53 = math.tanh %52 : vector<8x32xf32>
    %54 = arith.mulf %49, %53 : vector<8x32xf32>
    %55 = arith.truncf %54 : vector<8x32xf32> to vector<8x32xbf16>
    %cst_16 = arith.constant dense<0.000000e+00> : vector<8x128xf32>
    %56 = tpu.matmul %55, %6, %cst_16 {dimension_numbers = #tpu.dot_dimension_numbers<[1], [0], [0], [1], [0, 0, 1, 1], [], []>} : vector<8x32xbf16>, vector<32x128xbf16>, vector<8x128xf32> -> vector<8x128xf32>
    %57 = vector.extract_strided_slice %12 {offsets = [16, 0], sizes = [8, 128], strides = [1, 1]} : vector<64x128xf32> to vector<8x128xf32>
    %58 = arith.addf %56, %57 : vector<8x128xf32>
    %59 = vector.extract_strided_slice %58 {offsets = [0, 0], sizes = [8, 96], strides = [1, 1]} : vector<8x128xf32> to vector<8x96xf32>
    %60 = arith.negf %59 : vector<8x96xf32>
    %61 = math.exp %60 : vector<8x96xf32>
    %cst_17 = arith.constant 1.000000e+00 : f32
    %62 = vector.broadcast %cst_17 : f32 to vector<8x96xf32>
    %63 = arith.addf %62, %61 : vector<8x96xf32>
    %64 = arith.divf %62, %63 : vector<8x96xf32>
    %65 = vector.extract_strided_slice %58 {offsets = [0, 96], sizes = [8, 32], strides = [1, 1]} : vector<8x128xf32> to vector<8x32xf32>
    %66 = math.tanh %65 : vector<8x32xf32>
    %67 = vector.extract_strided_slice %64 {offsets = [0, 0], sizes = [8, 32], strides = [1, 1]} : vector<8x96xf32> to vector<8x32xf32>
    %68 = vector.extract_strided_slice %64 {offsets = [0, 32], sizes = [8, 32], strides = [1, 1]} : vector<8x96xf32> to vector<8x32xf32>
    %69 = vector.extract_strided_slice %64 {offsets = [0, 64], sizes = [8, 32], strides = [1, 1]} : vector<8x96xf32> to vector<8x32xf32>
    %70 = arith.mulf %68, %52 : vector<8x32xf32>
    %71 = arith.mulf %67, %66 : vector<8x32xf32>
    %72 = arith.addf %70, %71 : vector<8x32xf32>
    %73 = math.tanh %72 : vector<8x32xf32>
    %74 = arith.mulf %69, %73 : vector<8x32xf32>
    %75 = arith.truncf %74 : vector<8x32xf32> to vector<8x32xbf16>
    %cst_18 = arith.constant dense<0.000000e+00> : vector<8x128xf32>
    %76 = tpu.matmul %75, %6, %cst_18 {dimension_numbers = #tpu.dot_dimension_numbers<[1], [0], [0], [1], [0, 0, 1, 1], [], []>} : vector<8x32xbf16>, vector<32x128xbf16>, vector<8x128xf32> -> vector<8x128xf32>
    %77 = vector.extract_strided_slice %12 {offsets = [24, 0], sizes = [8, 128], strides = [1, 1]} : vector<64x128xf32> to vector<8x128xf32>
    %78 = arith.addf %76, %77 : vector<8x128xf32>
    %79 = vector.extract_strided_slice %78 {offsets = [0, 0], sizes = [8, 96], strides = [1, 1]} : vector<8x128xf32> to vector<8x96xf32>
    %80 = arith.negf %79 : vector<8x96xf32>
    %81 = math.exp %80 : vector<8x96xf32>
    %cst_19 = arith.constant 1.000000e+00 : f32
    %82 = vector.broadcast %cst_19 : f32 to vector<8x96xf32>
    %83 = arith.addf %82, %81 : vector<8x96xf32>
    %84 = arith.divf %82, %83 : vector<8x96xf32>
    %85 = vector.extract_strided_slice %78 {offsets = [0, 96], sizes = [8, 32], strides = [1, 1]} : vector<8x128xf32> to vector<8x32xf32>
    %86 = math.tanh %85 : vector<8x32xf32>
    %87 = vector.extract_strided_slice %84 {offsets = [0, 0], sizes = [8, 32], strides = [1, 1]} : vector<8x96xf32> to vector<8x32xf32>
    %88 = vector.extract_strided_slice %84 {offsets = [0, 32], sizes = [8, 32], strides = [1, 1]} : vector<8x96xf32> to vector<8x32xf32>
    %89 = vector.extract_strided_slice %84 {offsets = [0, 64], sizes = [8, 32], strides = [1, 1]} : vector<8x96xf32> to vector<8x32xf32>
    %90 = arith.mulf %88, %72 : vector<8x32xf32>
    %91 = arith.mulf %87, %86 : vector<8x32xf32>
    %92 = arith.addf %90, %91 : vector<8x32xf32>
    %93 = math.tanh %92 : vector<8x32xf32>
    %94 = arith.mulf %89, %93 : vector<8x32xf32>
    %95 = arith.truncf %94 : vector<8x32xf32> to vector<8x32xbf16>
    %cst_20 = arith.constant dense<0.000000e+00> : vector<8x128xf32>
    %96 = tpu.matmul %95, %6, %cst_20 {dimension_numbers = #tpu.dot_dimension_numbers<[1], [0], [0], [1], [0, 0, 1, 1], [], []>} : vector<8x32xbf16>, vector<32x128xbf16>, vector<8x128xf32> -> vector<8x128xf32>
    %97 = vector.extract_strided_slice %12 {offsets = [32, 0], sizes = [8, 128], strides = [1, 1]} : vector<64x128xf32> to vector<8x128xf32>
    %98 = arith.addf %96, %97 : vector<8x128xf32>
    %99 = vector.extract_strided_slice %98 {offsets = [0, 0], sizes = [8, 96], strides = [1, 1]} : vector<8x128xf32> to vector<8x96xf32>
    %100 = arith.negf %99 : vector<8x96xf32>
    %101 = math.exp %100 : vector<8x96xf32>
    %cst_21 = arith.constant 1.000000e+00 : f32
    %102 = vector.broadcast %cst_21 : f32 to vector<8x96xf32>
    %103 = arith.addf %102, %101 : vector<8x96xf32>
    %104 = arith.divf %102, %103 : vector<8x96xf32>
    %105 = vector.extract_strided_slice %98 {offsets = [0, 96], sizes = [8, 32], strides = [1, 1]} : vector<8x128xf32> to vector<8x32xf32>
    %106 = math.tanh %105 : vector<8x32xf32>
    %107 = vector.extract_strided_slice %104 {offsets = [0, 0], sizes = [8, 32], strides = [1, 1]} : vector<8x96xf32> to vector<8x32xf32>
    %108 = vector.extract_strided_slice %104 {offsets = [0, 32], sizes = [8, 32], strides = [1, 1]} : vector<8x96xf32> to vector<8x32xf32>
    %109 = vector.extract_strided_slice %104 {offsets = [0, 64], sizes = [8, 32], strides = [1, 1]} : vector<8x96xf32> to vector<8x32xf32>
    %110 = arith.mulf %108, %92 : vector<8x32xf32>
    %111 = arith.mulf %107, %106 : vector<8x32xf32>
    %112 = arith.addf %110, %111 : vector<8x32xf32>
    %113 = math.tanh %112 : vector<8x32xf32>
    %114 = arith.mulf %109, %113 : vector<8x32xf32>
    %115 = arith.truncf %114 : vector<8x32xf32> to vector<8x32xbf16>
    %cst_22 = arith.constant dense<0.000000e+00> : vector<8x128xf32>
    %116 = tpu.matmul %115, %6, %cst_22 {dimension_numbers = #tpu.dot_dimension_numbers<[1], [0], [0], [1], [0, 0, 1, 1], [], []>} : vector<8x32xbf16>, vector<32x128xbf16>, vector<8x128xf32> -> vector<8x128xf32>
    %117 = vector.extract_strided_slice %12 {offsets = [40, 0], sizes = [8, 128], strides = [1, 1]} : vector<64x128xf32> to vector<8x128xf32>
    %118 = arith.addf %116, %117 : vector<8x128xf32>
    %119 = vector.extract_strided_slice %118 {offsets = [0, 0], sizes = [8, 96], strides = [1, 1]} : vector<8x128xf32> to vector<8x96xf32>
    %120 = arith.negf %119 : vector<8x96xf32>
    %121 = math.exp %120 : vector<8x96xf32>
    %cst_23 = arith.constant 1.000000e+00 : f32
    %122 = vector.broadcast %cst_23 : f32 to vector<8x96xf32>
    %123 = arith.addf %122, %121 : vector<8x96xf32>
    %124 = arith.divf %122, %123 : vector<8x96xf32>
    %125 = vector.extract_strided_slice %118 {offsets = [0, 96], sizes = [8, 32], strides = [1, 1]} : vector<8x128xf32> to vector<8x32xf32>
    %126 = math.tanh %125 : vector<8x32xf32>
    %127 = vector.extract_strided_slice %124 {offsets = [0, 0], sizes = [8, 32], strides = [1, 1]} : vector<8x96xf32> to vector<8x32xf32>
    %128 = vector.extract_strided_slice %124 {offsets = [0, 32], sizes = [8, 32], strides = [1, 1]} : vector<8x96xf32> to vector<8x32xf32>
    %129 = vector.extract_strided_slice %124 {offsets = [0, 64], sizes = [8, 32], strides = [1, 1]} : vector<8x96xf32> to vector<8x32xf32>
    %130 = arith.mulf %128, %112 : vector<8x32xf32>
    %131 = arith.mulf %127, %126 : vector<8x32xf32>
    %132 = arith.addf %130, %131 : vector<8x32xf32>
    %133 = math.tanh %132 : vector<8x32xf32>
    %134 = arith.mulf %129, %133 : vector<8x32xf32>
    %135 = arith.truncf %134 : vector<8x32xf32> to vector<8x32xbf16>
    %cst_24 = arith.constant dense<0.000000e+00> : vector<8x128xf32>
    %136 = tpu.matmul %135, %6, %cst_24 {dimension_numbers = #tpu.dot_dimension_numbers<[1], [0], [0], [1], [0, 0, 1, 1], [], []>} : vector<8x32xbf16>, vector<32x128xbf16>, vector<8x128xf32> -> vector<8x128xf32>
    %137 = vector.extract_strided_slice %12 {offsets = [48, 0], sizes = [8, 128], strides = [1, 1]} : vector<64x128xf32> to vector<8x128xf32>
    %138 = arith.addf %136, %137 : vector<8x128xf32>
    %139 = vector.extract_strided_slice %138 {offsets = [0, 0], sizes = [8, 96], strides = [1, 1]} : vector<8x128xf32> to vector<8x96xf32>
    %140 = arith.negf %139 : vector<8x96xf32>
    %141 = math.exp %140 : vector<8x96xf32>
    %cst_25 = arith.constant 1.000000e+00 : f32
    %142 = vector.broadcast %cst_25 : f32 to vector<8x96xf32>
    %143 = arith.addf %142, %141 : vector<8x96xf32>
    %144 = arith.divf %142, %143 : vector<8x96xf32>
    %145 = vector.extract_strided_slice %138 {offsets = [0, 96], sizes = [8, 32], strides = [1, 1]} : vector<8x128xf32> to vector<8x32xf32>
    %146 = math.tanh %145 : vector<8x32xf32>
    %147 = vector.extract_strided_slice %144 {offsets = [0, 0], sizes = [8, 32], strides = [1, 1]} : vector<8x96xf32> to vector<8x32xf32>
    %148 = vector.extract_strided_slice %144 {offsets = [0, 32], sizes = [8, 32], strides = [1, 1]} : vector<8x96xf32> to vector<8x32xf32>
    %149 = vector.extract_strided_slice %144 {offsets = [0, 64], sizes = [8, 32], strides = [1, 1]} : vector<8x96xf32> to vector<8x32xf32>
    %150 = arith.mulf %148, %132 : vector<8x32xf32>
    %151 = arith.mulf %147, %146 : vector<8x32xf32>
    %152 = arith.addf %150, %151 : vector<8x32xf32>
    %153 = math.tanh %152 : vector<8x32xf32>
    %154 = arith.mulf %149, %153 : vector<8x32xf32>
    %155 = arith.truncf %154 : vector<8x32xf32> to vector<8x32xbf16>
    %cst_26 = arith.constant dense<0.000000e+00> : vector<8x128xf32>
    %156 = tpu.matmul %155, %6, %cst_26 {dimension_numbers = #tpu.dot_dimension_numbers<[1], [0], [0], [1], [0, 0, 1, 1], [], []>} : vector<8x32xbf16>, vector<32x128xbf16>, vector<8x128xf32> -> vector<8x128xf32>
    %157 = vector.extract_strided_slice %12 {offsets = [56, 0], sizes = [8, 128], strides = [1, 1]} : vector<64x128xf32> to vector<8x128xf32>
    %158 = arith.addf %156, %157 : vector<8x128xf32>
    %159 = vector.extract_strided_slice %158 {offsets = [0, 0], sizes = [8, 96], strides = [1, 1]} : vector<8x128xf32> to vector<8x96xf32>
    %160 = arith.negf %159 : vector<8x96xf32>
    %161 = math.exp %160 : vector<8x96xf32>
    %cst_27 = arith.constant 1.000000e+00 : f32
    %162 = vector.broadcast %cst_27 : f32 to vector<8x96xf32>
    %163 = arith.addf %162, %161 : vector<8x96xf32>
    %164 = arith.divf %162, %163 : vector<8x96xf32>
    %165 = vector.extract_strided_slice %158 {offsets = [0, 96], sizes = [8, 32], strides = [1, 1]} : vector<8x128xf32> to vector<8x32xf32>
    %166 = math.tanh %165 : vector<8x32xf32>
    %167 = vector.extract_strided_slice %164 {offsets = [0, 0], sizes = [8, 32], strides = [1, 1]} : vector<8x96xf32> to vector<8x32xf32>
    %168 = vector.extract_strided_slice %164 {offsets = [0, 32], sizes = [8, 32], strides = [1, 1]} : vector<8x96xf32> to vector<8x32xf32>
    %169 = vector.extract_strided_slice %164 {offsets = [0, 64], sizes = [8, 32], strides = [1, 1]} : vector<8x96xf32> to vector<8x32xf32>
    %170 = arith.mulf %168, %152 : vector<8x32xf32>
    %171 = arith.mulf %167, %166 : vector<8x32xf32>
    %172 = arith.addf %170, %171 : vector<8x32xf32>
    %173 = math.tanh %172 : vector<8x32xf32>
    %174 = arith.mulf %169, %173 : vector<8x32xf32>
    %175 = tpu.concatenate %34, %54, %74, %94, %114, %134, %154, %174 in 0 : vector<8x32xf32>, vector<8x32xf32>, vector<8x32xf32>, vector<8x32xf32>, vector<8x32xf32>, vector<8x32xf32>, vector<8x32xf32>, vector<8x32xf32> -> vector<64x32xf32>
    %c1 = arith.constant 1 : index
    %c0_28 = arith.constant 0 : index
    %c0_29 = arith.constant 0 : index
    %176 = vector.load %arg1[%c1, %c0_28, %c0_29] : memref<2x32x128xf32, #tpu.memory_space<vmem>>, vector<1x32x128xf32>
    %177 = vector.shape_cast %176 : vector<1x32x128xf32> to vector<32x128xf32>
    %178 = arith.truncf %177 : vector<32x128xf32> to vector<32x128xbf16>
    %c1_30 = arith.constant 1 : index
    %c0_31 = arith.constant 0 : index
    %c0_32 = arith.constant 0 : index
    %179 = vector.load %arg2[%c1_30, %c0_31, %c0_32] : memref<2x32x128xf32, #tpu.memory_space<vmem>>, vector<1x32x128xf32>
    %180 = vector.shape_cast %179 : vector<1x32x128xf32> to vector<32x128xf32>
    %181 = arith.truncf %180 : vector<32x128xf32> to vector<32x128xbf16>
    %c1_33 = arith.constant 1 : index
    %c0_34 = arith.constant 0 : index
    %c0_35 = arith.constant 0 : index
    %182 = vector.load %arg3[%c1_33, %c0_34, %c0_35] : memref<2x1x128xf32, #tpu.memory_space<vmem>>, vector<1x1x128xf32>
    %183 = vector.shape_cast %182 : vector<1x1x128xf32> to vector<1x128xf32>
    %184 = arith.truncf %175 : vector<64x32xf32> to vector<64x32xbf16>
    %cst_36 = arith.constant dense<0.000000e+00> : vector<64x128xf32>
    %185 = tpu.matmul %184, %178, %cst_36 {dimension_numbers = #tpu.dot_dimension_numbers<[1], [0], [0], [1], [0, 0, 1, 1], [], []>} : vector<64x32xbf16>, vector<32x128xbf16>, vector<64x128xf32> -> vector<64x128xf32>
    %186 = vector.broadcast %183 : vector<1x128xf32> to vector<64x128xf32>
    %187 = arith.addf %185, %186 : vector<64x128xf32>
    %cst_37 = arith.constant 0.000000e+00 : f32
    %188 = vector.broadcast %cst_37 : f32 to vector<8x32xf32>
    %cst_38 = arith.constant 0.000000e+00 : f32
    %189 = vector.broadcast %cst_38 : f32 to vector<8x32xf32>
    %190 = arith.truncf %188 : vector<8x32xf32> to vector<8x32xbf16>
    %cst_39 = arith.constant dense<0.000000e+00> : vector<8x128xf32>
    %191 = tpu.matmul %190, %181, %cst_39 {dimension_numbers = #tpu.dot_dimension_numbers<[1], [0], [0], [1], [0, 0, 1, 1], [], []>} : vector<8x32xbf16>, vector<32x128xbf16>, vector<8x128xf32> -> vector<8x128xf32>
    %192 = vector.extract_strided_slice %187 {offsets = [0, 0], sizes = [8, 128], strides = [1, 1]} : vector<64x128xf32> to vector<8x128xf32>
    %193 = arith.addf %191, %192 : vector<8x128xf32>
    %194 = vector.extract_strided_slice %193 {offsets = [0, 0], sizes = [8, 96], strides = [1, 1]} : vector<8x128xf32> to vector<8x96xf32>
    %195 = arith.negf %194 : vector<8x96xf32>
    %196 = math.exp %195 : vector<8x96xf32>
    %cst_40 = arith.constant 1.000000e+00 : f32
    %197 = vector.broadcast %cst_40 : f32 to vector<8x96xf32>
    %198 = arith.addf %197, %196 : vector<8x96xf32>
    %199 = arith.divf %197, %198 : vector<8x96xf32>
    %200 = vector.extract_strided_slice %193 {offsets = [0, 96], sizes = [8, 32], strides = [1, 1]} : vector<8x128xf32> to vector<8x32xf32>
    %201 = math.tanh %200 : vector<8x32xf32>
    %202 = vector.extract_strided_slice %199 {offsets = [0, 0], sizes = [8, 32], strides = [1, 1]} : vector<8x96xf32> to vector<8x32xf32>
    %203 = vector.extract_strided_slice %199 {offsets = [0, 32], sizes = [8, 32], strides = [1, 1]} : vector<8x96xf32> to vector<8x32xf32>
    %204 = vector.extract_strided_slice %199 {offsets = [0, 64], sizes = [8, 32], strides = [1, 1]} : vector<8x96xf32> to vector<8x32xf32>
    %205 = arith.mulf %203, %189 : vector<8x32xf32>
    %206 = arith.mulf %202, %201 : vector<8x32xf32>
    %207 = arith.addf %205, %206 : vector<8x32xf32>
    %208 = math.tanh %207 : vector<8x32xf32>
    %209 = arith.mulf %204, %208 : vector<8x32xf32>
    %210 = arith.truncf %209 : vector<8x32xf32> to vector<8x32xbf16>
    %cst_41 = arith.constant dense<0.000000e+00> : vector<8x128xf32>
    %211 = tpu.matmul %210, %181, %cst_41 {dimension_numbers = #tpu.dot_dimension_numbers<[1], [0], [0], [1], [0, 0, 1, 1], [], []>} : vector<8x32xbf16>, vector<32x128xbf16>, vector<8x128xf32> -> vector<8x128xf32>
    %212 = vector.extract_strided_slice %187 {offsets = [8, 0], sizes = [8, 128], strides = [1, 1]} : vector<64x128xf32> to vector<8x128xf32>
    %213 = arith.addf %211, %212 : vector<8x128xf32>
    %214 = vector.extract_strided_slice %213 {offsets = [0, 0], sizes = [8, 96], strides = [1, 1]} : vector<8x128xf32> to vector<8x96xf32>
    %215 = arith.negf %214 : vector<8x96xf32>
    %216 = math.exp %215 : vector<8x96xf32>
    %cst_42 = arith.constant 1.000000e+00 : f32
    %217 = vector.broadcast %cst_42 : f32 to vector<8x96xf32>
    %218 = arith.addf %217, %216 : vector<8x96xf32>
    %219 = arith.divf %217, %218 : vector<8x96xf32>
    %220 = vector.extract_strided_slice %213 {offsets = [0, 96], sizes = [8, 32], strides = [1, 1]} : vector<8x128xf32> to vector<8x32xf32>
    %221 = math.tanh %220 : vector<8x32xf32>
    %222 = vector.extract_strided_slice %219 {offsets = [0, 0], sizes = [8, 32], strides = [1, 1]} : vector<8x96xf32> to vector<8x32xf32>
    %223 = vector.extract_strided_slice %219 {offsets = [0, 32], sizes = [8, 32], strides = [1, 1]} : vector<8x96xf32> to vector<8x32xf32>
    %224 = vector.extract_strided_slice %219 {offsets = [0, 64], sizes = [8, 32], strides = [1, 1]} : vector<8x96xf32> to vector<8x32xf32>
    %225 = arith.mulf %223, %207 : vector<8x32xf32>
    %226 = arith.mulf %222, %221 : vector<8x32xf32>
    %227 = arith.addf %225, %226 : vector<8x32xf32>
    %228 = math.tanh %227 : vector<8x32xf32>
    %229 = arith.mulf %224, %228 : vector<8x32xf32>
    %230 = arith.truncf %229 : vector<8x32xf32> to vector<8x32xbf16>
    %cst_43 = arith.constant dense<0.000000e+00> : vector<8x128xf32>
    %231 = tpu.matmul %230, %181, %cst_43 {dimension_numbers = #tpu.dot_dimension_numbers<[1], [0], [0], [1], [0, 0, 1, 1], [], []>} : vector<8x32xbf16>, vector<32x128xbf16>, vector<8x128xf32> -> vector<8x128xf32>
    %232 = vector.extract_strided_slice %187 {offsets = [16, 0], sizes = [8, 128], strides = [1, 1]} : vector<64x128xf32> to vector<8x128xf32>
    %233 = arith.addf %231, %232 : vector<8x128xf32>
    %234 = vector.extract_strided_slice %233 {offsets = [0, 0], sizes = [8, 96], strides = [1, 1]} : vector<8x128xf32> to vector<8x96xf32>
    %235 = arith.negf %234 : vector<8x96xf32>
    %236 = math.exp %235 : vector<8x96xf32>
    %cst_44 = arith.constant 1.000000e+00 : f32
    %237 = vector.broadcast %cst_44 : f32 to vector<8x96xf32>
    %238 = arith.addf %237, %236 : vector<8x96xf32>
    %239 = arith.divf %237, %238 : vector<8x96xf32>
    %240 = vector.extract_strided_slice %233 {offsets = [0, 96], sizes = [8, 32], strides = [1, 1]} : vector<8x128xf32> to vector<8x32xf32>
    %241 = math.tanh %240 : vector<8x32xf32>
    %242 = vector.extract_strided_slice %239 {offsets = [0, 0], sizes = [8, 32], strides = [1, 1]} : vector<8x96xf32> to vector<8x32xf32>
    %243 = vector.extract_strided_slice %239 {offsets = [0, 32], sizes = [8, 32], strides = [1, 1]} : vector<8x96xf32> to vector<8x32xf32>
    %244 = vector.extract_strided_slice %239 {offsets = [0, 64], sizes = [8, 32], strides = [1, 1]} : vector<8x96xf32> to vector<8x32xf32>
    %245 = arith.mulf %243, %227 : vector<8x32xf32>
    %246 = arith.mulf %242, %241 : vector<8x32xf32>
    %247 = arith.addf %245, %246 : vector<8x32xf32>
    %248 = math.tanh %247 : vector<8x32xf32>
    %249 = arith.mulf %244, %248 : vector<8x32xf32>
    %250 = arith.truncf %249 : vector<8x32xf32> to vector<8x32xbf16>
    %cst_45 = arith.constant dense<0.000000e+00> : vector<8x128xf32>
    %251 = tpu.matmul %250, %181, %cst_45 {dimension_numbers = #tpu.dot_dimension_numbers<[1], [0], [0], [1], [0, 0, 1, 1], [], []>} : vector<8x32xbf16>, vector<32x128xbf16>, vector<8x128xf32> -> vector<8x128xf32>
    %252 = vector.extract_strided_slice %187 {offsets = [24, 0], sizes = [8, 128], strides = [1, 1]} : vector<64x128xf32> to vector<8x128xf32>
    %253 = arith.addf %251, %252 : vector<8x128xf32>
    %254 = vector.extract_strided_slice %253 {offsets = [0, 0], sizes = [8, 96], strides = [1, 1]} : vector<8x128xf32> to vector<8x96xf32>
    %255 = arith.negf %254 : vector<8x96xf32>
    %256 = math.exp %255 : vector<8x96xf32>
    %cst_46 = arith.constant 1.000000e+00 : f32
    %257 = vector.broadcast %cst_46 : f32 to vector<8x96xf32>
    %258 = arith.addf %257, %256 : vector<8x96xf32>
    %259 = arith.divf %257, %258 : vector<8x96xf32>
    %260 = vector.extract_strided_slice %253 {offsets = [0, 96], sizes = [8, 32], strides = [1, 1]} : vector<8x128xf32> to vector<8x32xf32>
    %261 = math.tanh %260 : vector<8x32xf32>
    %262 = vector.extract_strided_slice %259 {offsets = [0, 0], sizes = [8, 32], strides = [1, 1]} : vector<8x96xf32> to vector<8x32xf32>
    %263 = vector.extract_strided_slice %259 {offsets = [0, 32], sizes = [8, 32], strides = [1, 1]} : vector<8x96xf32> to vector<8x32xf32>
    %264 = vector.extract_strided_slice %259 {offsets = [0, 64], sizes = [8, 32], strides = [1, 1]} : vector<8x96xf32> to vector<8x32xf32>
    %265 = arith.mulf %263, %247 : vector<8x32xf32>
    %266 = arith.mulf %262, %261 : vector<8x32xf32>
    %267 = arith.addf %265, %266 : vector<8x32xf32>
    %268 = math.tanh %267 : vector<8x32xf32>
    %269 = arith.mulf %264, %268 : vector<8x32xf32>
    %270 = arith.truncf %269 : vector<8x32xf32> to vector<8x32xbf16>
    %cst_47 = arith.constant dense<0.000000e+00> : vector<8x128xf32>
    %271 = tpu.matmul %270, %181, %cst_47 {dimension_numbers = #tpu.dot_dimension_numbers<[1], [0], [0], [1], [0, 0, 1, 1], [], []>} : vector<8x32xbf16>, vector<32x128xbf16>, vector<8x128xf32> -> vector<8x128xf32>
    %272 = vector.extract_strided_slice %187 {offsets = [32, 0], sizes = [8, 128], strides = [1, 1]} : vector<64x128xf32> to vector<8x128xf32>
    %273 = arith.addf %271, %272 : vector<8x128xf32>
    %274 = vector.extract_strided_slice %273 {offsets = [0, 0], sizes = [8, 96], strides = [1, 1]} : vector<8x128xf32> to vector<8x96xf32>
    %275 = arith.negf %274 : vector<8x96xf32>
    %276 = math.exp %275 : vector<8x96xf32>
    %cst_48 = arith.constant 1.000000e+00 : f32
    %277 = vector.broadcast %cst_48 : f32 to vector<8x96xf32>
    %278 = arith.addf %277, %276 : vector<8x96xf32>
    %279 = arith.divf %277, %278 : vector<8x96xf32>
    %280 = vector.extract_strided_slice %273 {offsets = [0, 96], sizes = [8, 32], strides = [1, 1]} : vector<8x128xf32> to vector<8x32xf32>
    %281 = math.tanh %280 : vector<8x32xf32>
    %282 = vector.extract_strided_slice %279 {offsets = [0, 0], sizes = [8, 32], strides = [1, 1]} : vector<8x96xf32> to vector<8x32xf32>
    %283 = vector.extract_strided_slice %279 {offsets = [0, 32], sizes = [8, 32], strides = [1, 1]} : vector<8x96xf32> to vector<8x32xf32>
    %284 = vector.extract_strided_slice %279 {offsets = [0, 64], sizes = [8, 32], strides = [1, 1]} : vector<8x96xf32> to vector<8x32xf32>
    %285 = arith.mulf %283, %267 : vector<8x32xf32>
    %286 = arith.mulf %282, %281 : vector<8x32xf32>
    %287 = arith.addf %285, %286 : vector<8x32xf32>
    %288 = math.tanh %287 : vector<8x32xf32>
    %289 = arith.mulf %284, %288 : vector<8x32xf32>
    %290 = arith.truncf %289 : vector<8x32xf32> to vector<8x32xbf16>
    %cst_49 = arith.constant dense<0.000000e+00> : vector<8x128xf32>
    %291 = tpu.matmul %290, %181, %cst_49 {dimension_numbers = #tpu.dot_dimension_numbers<[1], [0], [0], [1], [0, 0, 1, 1], [], []>} : vector<8x32xbf16>, vector<32x128xbf16>, vector<8x128xf32> -> vector<8x128xf32>
    %292 = vector.extract_strided_slice %187 {offsets = [40, 0], sizes = [8, 128], strides = [1, 1]} : vector<64x128xf32> to vector<8x128xf32>
    %293 = arith.addf %291, %292 : vector<8x128xf32>
    %294 = vector.extract_strided_slice %293 {offsets = [0, 0], sizes = [8, 96], strides = [1, 1]} : vector<8x128xf32> to vector<8x96xf32>
    %295 = arith.negf %294 : vector<8x96xf32>
    %296 = math.exp %295 : vector<8x96xf32>
    %cst_50 = arith.constant 1.000000e+00 : f32
    %297 = vector.broadcast %cst_50 : f32 to vector<8x96xf32>
    %298 = arith.addf %297, %296 : vector<8x96xf32>
    %299 = arith.divf %297, %298 : vector<8x96xf32>
    %300 = vector.extract_strided_slice %293 {offsets = [0, 96], sizes = [8, 32], strides = [1, 1]} : vector<8x128xf32> to vector<8x32xf32>
    %301 = math.tanh %300 : vector<8x32xf32>
    %302 = vector.extract_strided_slice %299 {offsets = [0, 0], sizes = [8, 32], strides = [1, 1]} : vector<8x96xf32> to vector<8x32xf32>
    %303 = vector.extract_strided_slice %299 {offsets = [0, 32], sizes = [8, 32], strides = [1, 1]} : vector<8x96xf32> to vector<8x32xf32>
    %304 = vector.extract_strided_slice %299 {offsets = [0, 64], sizes = [8, 32], strides = [1, 1]} : vector<8x96xf32> to vector<8x32xf32>
    %305 = arith.mulf %303, %287 : vector<8x32xf32>
    %306 = arith.mulf %302, %301 : vector<8x32xf32>
    %307 = arith.addf %305, %306 : vector<8x32xf32>
    %308 = math.tanh %307 : vector<8x32xf32>
    %309 = arith.mulf %304, %308 : vector<8x32xf32>
    %310 = arith.truncf %309 : vector<8x32xf32> to vector<8x32xbf16>
    %cst_51 = arith.constant dense<0.000000e+00> : vector<8x128xf32>
    %311 = tpu.matmul %310, %181, %cst_51 {dimension_numbers = #tpu.dot_dimension_numbers<[1], [0], [0], [1], [0, 0, 1, 1], [], []>} : vector<8x32xbf16>, vector<32x128xbf16>, vector<8x128xf32> -> vector<8x128xf32>
    %312 = vector.extract_strided_slice %187 {offsets = [48, 0], sizes = [8, 128], strides = [1, 1]} : vector<64x128xf32> to vector<8x128xf32>
    %313 = arith.addf %311, %312 : vector<8x128xf32>
    %314 = vector.extract_strided_slice %313 {offsets = [0, 0], sizes = [8, 96], strides = [1, 1]} : vector<8x128xf32> to vector<8x96xf32>
    %315 = arith.negf %314 : vector<8x96xf32>
    %316 = math.exp %315 : vector<8x96xf32>
    %cst_52 = arith.constant 1.000000e+00 : f32
    %317 = vector.broadcast %cst_52 : f32 to vector<8x96xf32>
    %318 = arith.addf %317, %316 : vector<8x96xf32>
    %319 = arith.divf %317, %318 : vector<8x96xf32>
    %320 = vector.extract_strided_slice %313 {offsets = [0, 96], sizes = [8, 32], strides = [1, 1]} : vector<8x128xf32> to vector<8x32xf32>
    %321 = math.tanh %320 : vector<8x32xf32>
    %322 = vector.extract_strided_slice %319 {offsets = [0, 0], sizes = [8, 32], strides = [1, 1]} : vector<8x96xf32> to vector<8x32xf32>
    %323 = vector.extract_strided_slice %319 {offsets = [0, 32], sizes = [8, 32], strides = [1, 1]} : vector<8x96xf32> to vector<8x32xf32>
    %324 = vector.extract_strided_slice %319 {offsets = [0, 64], sizes = [8, 32], strides = [1, 1]} : vector<8x96xf32> to vector<8x32xf32>
    %325 = arith.mulf %323, %307 : vector<8x32xf32>
    %326 = arith.mulf %322, %321 : vector<8x32xf32>
    %327 = arith.addf %325, %326 : vector<8x32xf32>
    %328 = math.tanh %327 : vector<8x32xf32>
    %329 = arith.mulf %324, %328 : vector<8x32xf32>
    %330 = arith.truncf %329 : vector<8x32xf32> to vector<8x32xbf16>
    %cst_53 = arith.constant dense<0.000000e+00> : vector<8x128xf32>
    %331 = tpu.matmul %330, %181, %cst_53 {dimension_numbers = #tpu.dot_dimension_numbers<[1], [0], [0], [1], [0, 0, 1, 1], [], []>} : vector<8x32xbf16>, vector<32x128xbf16>, vector<8x128xf32> -> vector<8x128xf32>
    %332 = vector.extract_strided_slice %187 {offsets = [56, 0], sizes = [8, 128], strides = [1, 1]} : vector<64x128xf32> to vector<8x128xf32>
    %333 = arith.addf %331, %332 : vector<8x128xf32>
    %334 = vector.extract_strided_slice %333 {offsets = [0, 0], sizes = [8, 96], strides = [1, 1]} : vector<8x128xf32> to vector<8x96xf32>
    %335 = arith.negf %334 : vector<8x96xf32>
    %336 = math.exp %335 : vector<8x96xf32>
    %cst_54 = arith.constant 1.000000e+00 : f32
    %337 = vector.broadcast %cst_54 : f32 to vector<8x96xf32>
    %338 = arith.addf %337, %336 : vector<8x96xf32>
    %339 = arith.divf %337, %338 : vector<8x96xf32>
    %340 = vector.extract_strided_slice %333 {offsets = [0, 96], sizes = [8, 32], strides = [1, 1]} : vector<8x128xf32> to vector<8x32xf32>
    %341 = math.tanh %340 : vector<8x32xf32>
    %342 = vector.extract_strided_slice %339 {offsets = [0, 0], sizes = [8, 32], strides = [1, 1]} : vector<8x96xf32> to vector<8x32xf32>
    %343 = vector.extract_strided_slice %339 {offsets = [0, 32], sizes = [8, 32], strides = [1, 1]} : vector<8x96xf32> to vector<8x32xf32>
    %344 = vector.extract_strided_slice %339 {offsets = [0, 64], sizes = [8, 32], strides = [1, 1]} : vector<8x96xf32> to vector<8x32xf32>
    %345 = arith.mulf %343, %327 : vector<8x32xf32>
    %346 = arith.mulf %342, %341 : vector<8x32xf32>
    %347 = arith.addf %345, %346 : vector<8x32xf32>
    %348 = math.tanh %347 : vector<8x32xf32>
    %349 = arith.mulf %344, %348 : vector<8x32xf32>
    %350 = arith.truncf %349 : vector<8x32xf32> to vector<8x32xbf16>
    %c0_55 = arith.constant 0 : index
    %c0_56 = arith.constant 0 : index
    %351 = vector.load %arg4[%c0_55, %c0_56] : memref<32x128xf32, #tpu.memory_space<vmem>>, vector<32x128xf32>
    %352 = arith.truncf %351 : vector<32x128xf32> to vector<32x128xbf16>
    %cst_57 = arith.constant dense<0.000000e+00> : vector<8x128xf32>
    %353 = tpu.matmul %350, %352, %cst_57 {dimension_numbers = #tpu.dot_dimension_numbers<[1], [0], [0], [1], [0, 0, 1, 1], [], []>} : vector<8x32xbf16>, vector<32x128xbf16>, vector<8x128xf32> -> vector<8x128xf32>
    %c0_58 = arith.constant 0 : index
    %c0_59 = arith.constant 0 : index
    %354 = vector.load %arg5[%c0_58, %c0_59] : memref<1x128xf32, #tpu.memory_space<vmem>>, vector<1x128xf32>
    %355 = vector.broadcast %354 : vector<1x128xf32> to vector<8x128xf32>
    %356 = arith.addf %353, %355 : vector<8x128xf32>
    %c0_60 = arith.constant 0 : index
    %c0_61 = arith.constant 0 : index
    %357 = vector.load %arg6[%c0_60, %c0_61] : memref<8x128xf32, #tpu.memory_space<vmem>>, vector<8x128xf32>
    tpu.vector_store %arg6[%c0_60, %c0_61], %356 {strides = array<i32>} : memref<8x128xf32, #tpu.memory_space<vmem>>, vector<8x128xf32>,
    return
  }
}

</mosaic_0001>

<bundles_post_ra>
// kernel: tpu_custom_call.1
= control target key start
LH: loop header
LB: loop body
LE: loop exit
PB: predicated region body
PF: predicated region fallthrough
CT: control target
= control target key end

     0   :  { %11 = vsyncpa [#allocation3], 0  ;;  %s1737_s0 = inlined_call_operand.vmem [shape: f32[64,32], index: 0, kind: input, shape index: {}]   ;;  %s1738_s1 = inlined_call_operand.vmem [shape: f32[2,32,128], index: 1, kind: input, shape index: {}]   ;;  %s1739_s2 = inlined_call_operand.hbm [shape: f32[2,32,128], index: 2, kind: input, shape index: {}]   ;;  %s1740_s3 = inlined_call_operand.hbm [shape: f32[2,1,128], index: 3, kind: input, shape index: {}]   ;;  %s1741_s4 = inlined_call_operand.vmem [shape: f32[32,128], index: 4, kind: input, shape index: {}]   ;;  %s1742_s5 = inlined_call_operand.vmem [shape: f32[1,128], index: 5, kind: input, shape index: {}]   ;;  %s1743_s6 = inlined_call_operand.hbm [shape: f32[8,128], index: 6, kind: output, shape index: {}]  }
   0x1   :  { %12 = vsyncpa [#allocation6], 0 }
   0x2   :  { %13 = vsyncpa [#allocation4], 0  ;;  %s22_s23 = sshll.u32 %s1739_s2, 4  ;;  %s1416_s24 = smov [#allocation2]   ;;  %s23_s23 = int_to_ptr.hbm [resolvable:$true] %s22_s23 }
   0x3   :  { %s24_s25 = sshll.u32 %s1416_s24, 4  ;;  %s35_s28 = sshll.u32 %s1740_s3, 4  ;;  %s25_s25 = int_to_ptr.vmem [resolvable:$true] %s24_s25  ;;  %s36_s28 = int_to_ptr.hbm [resolvable:$true] %s35_s28 }
   0x4   :  { %s1417_s29 = smov 128   ;;  %s1418_s30 = smov 8  }
   0x5   :  { %30 = dma.hbm_to_vmem [thread:$0]  %s23_s23, 1024, %s25_s25, [#allocation3], %s1417_s29, %s1417_s29, %s1418_s30  }
   0x6   :  { %s1419_s7 = smov [#allocation5]   ;;  %s1420_s9 = smov 16  }
   0x7   :  { %s37_s8 = sshll.u32 %s1419_s7, 4  ;;  %s1421_s10 = smov 1   ;;  %s38_s8 = int_to_ptr.vmem [resolvable:$true] %s37_s8 }
   0x8   :  { %43 = dma.hbm_to_vmem [thread:$0]  %s36_s28, 32, %s38_s8, [#allocation6], %s1420_s9, %s1420_s9, %s1421_s10  }
   0x9   :  { %1410 = dma.done.wait [#allocation3], 1024  }
   0xa   :  { %1411 = vsyncadd [#allocation3], 4294966272 }
   0xb   :  { %1412 = dma.done.wait [#allocation6], 32  }
   0xc   :  { %1413 = vsyncadd [#allocation6], 4294967264  ;;  %v67_v0 = vld [vmem:[%s1738_s1 + $0x10] sm:$0xff]  ;;  %v68_v1 = vld [vmem:[%s1738_s1 + $0x18] sm:$0xff]  ;;  %vm85_vm0 = vcmask 261120   ;;  %v1422_v15 = vmov 0  }
   0xd   :  { %v73_v2 = vld [vmem:[#allocation2 + $0x10] sm:$0xff]  ;;  %v70_v3 = vpack.c.bf16 %v68_v1, %v67_v0  ;;  %v74_v4 = vld [vmem:[#allocation2 + $0x18] sm:$0xff]  ;;  %v65_v5 = vld [vmem:[%s1738_s1] sm:$0xff]  ;;  %s1423_s21 = smov 32   ;;  %s1424_s22 = smov 64  }
   0xe   :  { %v66_v6 = vld [vmem:[%s1738_s1 + $0x8] sm:$0xff]  ;;  %v1479_v7 = vpack.c.bf16 %v74_v4, %v73_v2  ;;  %v71_v8 = vld [vmem:[#allocation2] sm:$0xff]  ;;  %s1425_s26 = smov [#allocation7]  }
   0xf   :  { %v72_v9 = vld [vmem:[#allocation2 + $0x8] sm:$0xff]  ;;  %104 = vmatpush.bf16.msra.mxu0 %v70_v3  ;;  %v69_v10 = vpack.c.bf16 %v66_v6, %v65_v5  ;;  %v57_v11 = vld [vmem:[%s1737_s0] sm:$0xff]  ;;  %s1140_s27 = sshll.u32 %s1425_s26, 4  ;;  %s1141_s27 = int_to_ptr.vmem [resolvable:$true] %s1140_s27 }
  0x10   :  { %v58_v12 = vld [vmem:[%s1737_s0 + $0x8] sm:$0xff]  ;;  %136 = vmatpush.bf16.msra.mxu1 %v1479_v7  ;;  %v1488_v13 = vpack.c.bf16 %v72_v9, %v71_v8  ;;  %193 = vmatpush.bf16.msra.mxu2 %v1479_v7  ;;  %v1505_v16 = vld [vmem:[#allocation5] ss:$0 sm:$0xff]  ;;  %v60_v8 = vld [vmem:[%s1737_s0 + $0x18] sm:$0xff] }
  0x11   :  { %250 = vmatpush.bf16.msra.mxu3 %v1479_v7  ;;  %v78_v14 = vpack.c.bf16 %v58_v12, %v57_v11 }
  0x13   :  { %105 = vmatpush.bf16.msra.mxu0 %v69_v10 }
  0x14   :  { %137 = vmatpush.bf16.msra.mxu1 %v1488_v13  ;;  %194 = vmatpush.bf16.msra.mxu2 %v1488_v13 }
  0x15   :  { %251 = vmatpush.bf16.msra.mxu3 %v1488_v13 }
  0x16   :  { %1153 = vmatmul.msk.bf16.vlgmr.msra.gmra.mxu0 %vm85_vm0, %v78_v14 }
  0x17   :  { %138 = vmatmul.bf16.vlgmr.msra.gmra.mxu1 %v1422_v15 }
  0x18   :  { %307 = vmatpush.bf16.msrb.mxu1 %v1479_v7  ;;  %364 = vmatpush.bf16.msrb.mxu2 %v1479_v7 }
  0x19   :  { %421 = vmatpush.bf16.msrb.mxu3 %v1479_v7 }
  0x1c   :  { %308 = vmatpush.bf16.msrb.mxu1 %v1488_v13  ;;  %365 = vmatpush.bf16.msrb.mxu2 %v1488_v13 }
  0x1d   :  { %422 = vmatpush.bf16.msrb.mxu3 %v1488_v13 }
  0x20   :  { %478 = vmatpush.bf16.msra.mxu1 %v1479_v7 }
  0x24   :  { %479 = vmatpush.bf16.msra.mxu1 %v1488_v13 }
  0x93   :  { %v107_v17 = vpop.f32.mrf.mxu0 }
  0x94   :  { %v108_v18 = vadd.f32 %v1505_v16, %v107_v17  ;;  %v139_v19 = vpop.f32.mrf.mxu1 }
  0x96   :  { %v140_v20 = vadd.f32 %v139_v19, %v108_v18 }
  0x98   :  { %1209 = vtanh.f32 %v140_v20  ;;  %v1157_v23 = vmul.f32 -1.442695, %v140_v20 }
  0x9a   :  { %1211 = vpow2.f32 %v1157_v23 }
  0x9b   :  { %v109_v46 = vpop.f32.mrf.mxu0 }
  0x9c   :  { %v141_v21 = vpop.f32.mrf.mxu1  ;;  %v110_v47 = vadd.f32 %v1505_v16, %v109_v46 }
  0x9e   :  { %v1210_v22 = vpop.eup %1209 }
  0x9f   :  { %165 = vrot.lane.b32.xlu0 %v1210_v22, %s1423_s21 }
  0xa0   :  { %v1212_v24 = vpop.eup %1211 }
  0xa1   :  { %v146_v25 = vadd.f32 1.0, %v1212_v24 }
  0xa3   :  { %1213 = vrcp.f32 %v146_v25  ;;  %v158_v31 = vand.u32 2147483648, %v146_v25  ;;  %vm152_vm2 = vweird.f32 %v146_v25  ;;  %v156_v32 = vand.u32 2147483647, %v146_v25 }
  0xa5   :  { %v159_v34 = vor.u32 1.1754944e-38, %v158_v31  ;;  %vm157_vm4 = vcmp.eq.f32.partialorder %v156_v32, 8.507059e+37 }
  0xa9   :  { %v1214_v26 = vpop.eup %1213 }
  0xaa   :  { %v148_v27 = vmul.f32 %v1214_v26, %v146_v25  ;;  %vm153_vm1 = vweird.f32 %v1214_v26 }
  0xab   :  { %vm154_vm3 = vmor %vm152_vm2, %vm153_vm1 }
  0xac   :  { %v149_v28 = vsub.f32 1.0, %v148_v27 }
  0xae   :  { %v150_v29 = vmul.f32 %v1214_v26, %v149_v28 }
  0xb0   :  { %v151_v30 = vadd.f32 %v1214_v26, %v150_v29 }
  0xb2   :  { %v155_v33 = vsel %vm154_vm3, %v1214_v26, %v151_v30 }
  0xb3   :  { %v160_v36 = vsel %vm157_vm4, %v159_v34, %v155_v33 }
  0xb4   :  { %v163_v38 = vmul.f32 0.0, %v160_v36 }
 0x111   :  { %v166_v35 = vpop.permute.xlu0 %165 }
 0x112   :  { %v168_v37 = vmul.f32 %v166_v35, %v160_v36 }
 0x114   :  { %170 = vrot.lane.b32.xlu0 %v168_v37, %s1423_s21 }
 0x186   :  { %v171_v39 = vpop.permute.xlu0 %170 }
 0x187   :  { %v173_v40 = vadd.f32 %v171_v39, %v163_v38 }
 0x189   :  { %1215 = vtanh.f32 %v173_v40 }
 0x18f   :  { %v1216_v41 = vpop.eup %1215 }
 0x190   :  { %176 = vrot.lane.b32.xlu1 %v1216_v41, %s1423_s21 }
 0x202   :  { %v177_v42 = vpop.permute.xlu1 %176 }
 0x203   :  { %v1511_v43 = vmul.f32 %v177_v42, %v160_v36 }
 0x205   :  { %v180_v44 = vpack.c.bf16 %v1511_v43, %v1511_v43 }
 0x207   :  { %182 = vrot.lane.b32.xlu1 %v180_v44, %s1424_s22 }
 0x279   :  { %v183_v45 = vpop.permute.xlu1 %182 }
 0x27a   :  { %1158 = vmatmul.msk.bf16.vlgmr.msra.gmra.mxu2 %vm85_vm0, %v183_v45 }
 0x27b   :  { %535 = vmatpush.bf16.msra.mxu2 %v1479_v7  ;;  %v59_v7 = vld [vmem:[%s1737_s0 + $0x10] sm:$0xff] }
 0x27c   :  { %v79_v9 = vpack.c.bf16 %v60_v8, %v59_v7  ;;  %v61_v7 = vld [vmem:[%s1737_s0 + $0x20] sm:$0xff]  ;;  %v62_v8 = vld [vmem:[%s1737_s0 + $0x28] sm:$0xff] }
 0x27e   :  { %1154 = vmatmul.msk.bf16.gmra.mxu0 %vm85_vm0, %v79_v9  ;;  %v80_v9 = vpack.c.bf16 %v62_v8, %v61_v7  ;;  %v1175_v7 = vld [vmem:[%s1738_s1 + $0x38] sm:$0xff] }
 0x27f   :  { %536 = vmatpush.bf16.msra.mxu2 %v1488_v13 }
 0x28e   :  { %1155 = vmatmul.msk.bf16.gmra.mxu0 %vm85_vm0, %v80_v9  ;;  %v1172_v9 = vld [vmem:[%s1738_s1 + $0x20] sm:$0xff] }
 0x2fb   :  { %v112_v14 = vpop.f32.mrf.mxu0 }
 0x2fc   :  { %v113_v17 = vadd.f32 %v1505_v16, %v112_v14 }
 0x2fd   :  { %v196_v48 = vpop.f32.mrf.mxu2 }
 0x2fe   :  { %v197_v49 = vadd.f32 %v196_v48, %v110_v47 }
 0x300   :  { %1217 = vtanh.f32 %v197_v49  ;;  %v1159_v52 = vmul.f32 -1.442695, %v197_v49 }
 0x302   :  { %1219 = vpow2.f32 %v1159_v52 }
 0x303   :  { %v114_v46 = vpop.f32.mrf.mxu0 }
 0x304   :  { %v115_v47 = vadd.f32 %v1505_v16, %v114_v46 }
 0x305   :  { %v198_v50 = vpop.f32.mrf.mxu2 }
 0x306   :  { %v1218_v51 = vpop.eup %1217 }
 0x307   :  { %222 = vrot.lane.b32.xlu2 %v1218_v51, %s1423_s21 }
 0x308   :  { %v1220_v53 = vpop.eup %1219 }
 0x309   :  { %v203_v54 = vadd.f32 1.0, %v1220_v53 }
 0x30b   :  { %1221 = vrcp.f32 %v203_v54  ;;  %v215_v60 = vand.u32 2147483648, %v203_v54  ;;  %vm209_vm6 = vweird.f32 %v203_v54  ;;  %v213_v61 = vand.u32 2147483647, %v203_v54 }
 0x30d   :  { %v216_v63 = vor.u32 1.1754944e-38, %v215_v60  ;;  %vm214_vm8 = vcmp.eq.f32.partialorder %v213_v61, 8.507059e+37 }
 0x311   :  { %v1222_v55 = vpop.eup %1221 }
 0x312   :  { %v205_v56 = vmul.f32 %v1222_v55, %v203_v54  ;;  %vm210_vm5 = vweird.f32 %v1222_v55 }
 0x313   :  { %vm211_vm7 = vmor %vm209_vm6, %vm210_vm5 }
 0x314   :  { %v206_v57 = vsub.f32 1.0, %v205_v56 }
 0x316   :  { %v207_v58 = vmul.f32 %v1222_v55, %v206_v57 }
 0x318   :  { %v208_v59 = vadd.f32 %v1222_v55, %v207_v58 }
 0x31a   :  { %v212_v62 = vsel %vm211_vm7, %v1222_v55, %v208_v59 }
 0x31b   :  { %v217_v1 = vsel %vm214_vm8, %v216_v63, %v212_v62 }
 0x31c   :  { %v220_v3 = vmul.f32 %v217_v1, %v173_v40 }
 0x361   :  { %v223_v0 = vpop.permute.xlu2 %222 }
 0x362   :  { %v225_v2 = vmul.f32 %v223_v0, %v217_v1 }
 0x364   :  { %227 = vrot.lane.b32.xlu2 %v225_v2, %s1423_s21 }
 0x3be   :  { %v228_v4 = vpop.permute.xlu2 %227 }
 0x3bf   :  { %v230_v5 = vadd.f32 %v228_v4, %v220_v3 }
 0x3c1   :  { %1223 = vtanh.f32 %v230_v5 }
 0x3c7   :  { %v1224_v6 = vpop.eup %1223 }
 0x3c8   :  { %233 = vrot.lane.b32.xlu0 %v1224_v6, %s1423_s21 }
 0x43a   :  { %v234_v10 = vpop.permute.xlu0 %233 }
 0x43b   :  { %v1530_v11 = vmul.f32 %v234_v10, %v217_v1 }
 0x43d   :  { %v237_v12 = vpack.c.bf16 %v1530_v11, %v1530_v11 }
 0x43f   :  { %239 = vrot.lane.b32.xlu1 %v237_v12, %s1424_s22 }
 0x4b1   :  { %v240_v13 = vpop.permute.xlu1 %239 }
 0x4b2   :  { %1160 = vmatmul.msk.bf16.vlgmr.msra.gmra.mxu3 %vm85_vm0, %v240_v13 }
 0x535   :  { %v253_v18 = vpop.f32.mrf.mxu3 }
 0x536   :  { %v254_v19 = vadd.f32 %v253_v18, %v113_v17  ;;  %v117_v17 = vpop.f32.mrf.mxu0 }
 0x537   :  { %v118_v18 = vadd.f32 %v1505_v16, %v117_v17 }
 0x538   :  { %1225 = vtanh.f32 %v254_v19  ;;  %v1161_v22 = vmul.f32 -1.442695, %v254_v19 }
 0x53a   :  { %1227 = vpow2.f32 %v1161_v22 }
 0x53d   :  { %v255_v20 = vpop.f32.mrf.mxu3 }
 0x53e   :  { %v1226_v21 = vpop.eup %1225 }
 0x53f   :  { %279 = vrot.lane.b32.xlu2 %v1226_v21, %s1423_s21 }
 0x540   :  { %v1228_v23 = vpop.eup %1227 }
 0x541   :  { %v260_v24 = vadd.f32 1.0, %v1228_v23 }
 0x543   :  { %1229 = vrcp.f32 %v260_v24  ;;  %v272_v30 = vand.u32 2147483648, %v260_v24  ;;  %vm266_vm10 = vweird.f32 %v260_v24  ;;  %v270_v31 = vand.u32 2147483647, %v260_v24 }
 0x545   :  { %v273_v33 = vor.u32 1.1754944e-38, %v272_v30  ;;  %vm271_vm12 = vcmp.eq.f32.partialorder %v270_v31, 8.507059e+37 }
 0x549   :  { %v1230_v25 = vpop.eup %1229 }
 0x54a   :  { %v262_v26 = vmul.f32 %v1230_v25, %v260_v24  ;;  %vm267_vm9 = vweird.f32 %v1230_v25 }
 0x54b   :  { %vm268_vm11 = vmor %vm266_vm10, %vm267_vm9 }
 0x54c   :  { %v263_v27 = vsub.f32 1.0, %v262_v26 }
 0x54e   :  { %v264_v28 = vmul.f32 %v1230_v25, %v263_v27 }
 0x550   :  { %v265_v29 = vadd.f32 %v1230_v25, %v264_v28 }
 0x552   :  { %v269_v32 = vsel %vm268_vm11, %v1230_v25, %v265_v29 }
 0x553   :  { %v274_v35 = vsel %vm271_vm12, %v273_v33, %v269_v32 }
 0x554   :  { %v277_v37 = vmul.f32 %v274_v35, %v230_v5 }
 0x599   :  { %v280_v34 = vpop.permute.xlu2 %279 }
 0x59a   :  { %v282_v36 = vmul.f32 %v280_v34, %v274_v35 }
 0x59c   :  { %284 = vrot.lane.b32.xlu0 %v282_v36, %s1423_s21 }
 0x60e   :  { %v285_v38 = vpop.permute.xlu0 %284 }
 0x60f   :  { %v287_v39 = vadd.f32 %v285_v38, %v277_v37 }
 0x611   :  { %1231 = vtanh.f32 %v287_v39 }
 0x617   :  { %v1232_v40 = vpop.eup %1231 }
 0x618   :  { %290 = vrot.lane.b32.xlu1 %v1232_v40, %s1423_s21 }
 0x68a   :  { %v291_v41 = vpop.permute.xlu1 %290 }
 0x68b   :  { %v1540_v42 = vmul.f32 %v291_v41, %v274_v35 }
 0x68d   :  { %v294_v44 = vpack.c.bf16 %v1540_v42, %v1540_v42 }
 0x68f   :  { %296 = vrot.lane.b32.xlu2 %v294_v44, %s1424_s22 }
 0x6e9   :  { %v297_v45 = vpop.permute.xlu2 %296 }
 0x6ea   :  { %1162 = vmatmul.msk.bf16.vlgmr.msrb.gmra.mxu1 %vm85_vm0, %v297_v45 }
 0x767   :  { %v310_v48 = vpop.f32.mrf.mxu1 }
 0x768   :  { %v311_v49 = vadd.f32 %v310_v48, %v115_v47  ;;  %v119_v48 = vpop.f32.mrf.mxu0 }
 0x76a   :  { %1233 = vtanh.f32 %v311_v49  ;;  %v1163_v52 = vmul.f32 -1.442695, %v311_v49  ;;  %v120_v49 = vadd.f32 %v1505_v16, %v119_v48 }
 0x76c   :  { %1235 = vpow2.f32 %v1163_v52 }
 0x76f   :  { %v312_v50 = vpop.f32.mrf.mxu1 }
 0x770   :  { %v1234_v51 = vpop.eup %1233 }
 0x771   :  { %336 = vrot.lane.b32.xlu0 %v1234_v51, %s1423_s21 }
 0x772   :  { %v1236_v53 = vpop.eup %1235 }
 0x773   :  { %v317_v54 = vadd.f32 1.0, %v1236_v53 }
 0x775   :  { %1237 = vrcp.f32 %v317_v54  ;;  %v329_v60 = vand.u32 2147483648, %v317_v54  ;;  %vm323_vm14 = vweird.f32 %v317_v54  ;;  %v327_v61 = vand.u32 2147483647, %v317_v54 }
 0x777   :  { %v330_v63 = vor.u32 1.1754944e-38, %v329_v60  ;;  %vm328_vm1 = vcmp.eq.f32.partialorder %v327_v61, 8.507059e+37 }
 0x77b   :  { %v1238_v55 = vpop.eup %1237 }
 0x77c   :  { %v319_v56 = vmul.f32 %v1238_v55, %v317_v54  ;;  %vm324_vm13 = vweird.f32 %v1238_v55 }
 0x77d   :  { %vm325_vm15 = vmor %vm323_vm14, %vm324_vm13 }
 0x77e   :  { %v320_v57 = vsub.f32 1.0, %v319_v56 }
 0x780   :  { %v321_v58 = vmul.f32 %v1238_v55, %v320_v57 }
 0x782   :  { %v322_v59 = vadd.f32 %v1238_v55, %v321_v58 }
 0x784   :  { %v326_v62 = vsel %vm325_vm15, %v1238_v55, %v322_v59 }
 0x785   :  { %v331_v1 = vsel %vm328_vm1, %v330_v63, %v326_v62 }
 0x786   :  { %v334_v3 = vmul.f32 %v331_v1, %v287_v39 }
 0x7e3   :  { %v337_v0 = vpop.permute.xlu0 %336 }
 0x7e4   :  { %v339_v2 = vmul.f32 %v337_v0, %v331_v1 }
 0x7e6   :  { %341 = vrot.lane.b32.xlu1 %v339_v2, %s1423_s21 }
 0x858   :  { %v342_v4 = vpop.permute.xlu1 %341 }
 0x859   :  { %v344_v5 = vadd.f32 %v342_v4, %v334_v3 }
 0x85b   :  { %1239 = vtanh.f32 %v344_v5 }
 0x861   :  { %v1240_v6 = vpop.eup %1239 }
 0x862   :  { %347 = vrot.lane.b32.xlu2 %v1240_v6, %s1423_s21  ;;  %v1174_v6 = vld [vmem:[%s1738_s1 + $0x30] sm:$0xff] }
 0x863   :  { %v585_v8 = vpack.c.bf16 %v1175_v7, %v1174_v6 }
 0x865   :  { %632 = vmatpush.bf16.msra.mxu3 %v585_v8 }
 0x8bc   :  { %v348_v10 = vpop.permute.xlu2 %347 }
 0x8bd   :  { %v1557_v12 = vmul.f32 %v348_v10, %v331_v1 }
 0x8bf   :  { %v351_v13 = vpack.c.bf16 %v1557_v12, %v1557_v12 }
 0x8c1   :  { %353 = vrot.lane.b32.xlu0 %v351_v13, %s1424_s22 }
 0x933   :  { %v354_v14 = vpop.permute.xlu0 %353 }
 0x934   :  { %1164 = vmatmul.msk.bf16.vlgmr.msrb.gmra.mxu2 %vm85_vm0, %v354_v14 }
 0x9b7   :  { %v367_v19 = vpop.f32.mrf.mxu2 }
 0x9b8   :  { %v368_v20 = vadd.f32 %v367_v19, %v118_v18  ;;  %v63_v19 = vld [vmem:[%s1737_s0 + $0x30] sm:$0xff] }
 0x9ba   :  { %1241 = vtanh.f32 %v368_v20  ;;  %v1165_v23 = vmul.f32 -1.442695, %v368_v20  ;;  %v64_v20 = vld [vmem:[%s1737_s0 + $0x38] sm:$0xff] }
 0x9bc   :  { %1243 = vpow2.f32 %v1165_v23 }
 0x9bf   :  { %v369_v21 = vpop.f32.mrf.mxu2 }
 0x9c0   :  { %v1242_v22 = vpop.eup %1241  ;;  %v81_v21 = vpack.c.bf16 %v64_v20, %v63_v19 }
 0x9c1   :  { %393 = vrot.lane.b32.xlu1 %v1242_v22, %s1423_s21 }
 0x9c2   :  { %v1244_v24 = vpop.eup %1243  ;;  %1156 = vmatmul.msk.bf16.gmra.mxu0 %vm85_vm0, %v81_v21 }
 0x9c3   :  { %v374_v25 = vadd.f32 1.0, %v1244_v24 }
 0x9c5   :  { %1245 = vrcp.f32 %v374_v25  ;;  %v386_v31 = vand.u32 2147483648, %v374_v25  ;;  %vm380_vm3 = vweird.f32 %v374_v25  ;;  %v384_v32 = vand.u32 2147483647, %v374_v25 }
 0x9c7   :  { %v387_v34 = vor.u32 1.1754944e-38, %v386_v31  ;;  %vm385_vm5 = vcmp.eq.f32.partialorder %v384_v32, 8.507059e+37 }
 0x9cb   :  { %v1246_v26 = vpop.eup %1245 }
 0x9cc   :  { %v376_v27 = vmul.f32 %v1246_v26, %v374_v25  ;;  %vm381_vm2 = vweird.f32 %v1246_v26  ;;  %v589_v25 = vld [vmem:[#allocation2 + $0x30] sm:$0xff] }
 0x9cd   :  { %vm382_vm4 = vmor %vm380_vm3, %vm381_vm2 }
 0x9ce   :  { %v377_v28 = vsub.f32 1.0, %v376_v27  ;;  %v587_v27 = vld [vmem:[#allocation2 + $0x20] sm:$0xff] }
 0x9d0   :  { %v378_v29 = vmul.f32 %v1246_v26, %v377_v28 }
 0x9d2   :  { %v379_v30 = vadd.f32 %v1246_v26, %v378_v29  ;;  %v588_v29 = vld [vmem:[#allocation2 + $0x28] sm:$0xff] }
 0x9d4   :  { %v383_v33 = vsel %vm382_vm4, %v1246_v26, %v379_v30  ;;  %v590_v26 = vld [vmem:[#allocation2 + $0x38] sm:$0xff]  ;;  %v1611_v30 = vpack.c.bf16 %v588_v29, %v587_v27 }
 0x9d5   :  { %v388_v36 = vsel %vm385_vm5, %v387_v34, %v383_v33  ;;  %v1608_v28 = vpack.c.bf16 %v590_v26, %v589_v25 }
 0x9d6   :  { %v391_v38 = vmul.f32 %v388_v36, %v344_v5  ;;  %v595_v5 = vpack.c.bf16 %v1530_v11, %v1511_v43  ;;  %v1173_v43 = vld [vmem:[%s1738_s1 + $0x28] sm:$0xff] }
 0x9d7   :  { %v584_v11 = vpack.c.bf16 %v1173_v43, %v1172_v9  ;;  %661 = vmatpush.bf16.msrb.mxu1 %v1608_v28  ;;  %718 = vmatpush.bf16.msrb.mxu2 %v1608_v28 }
 0x9d8   :  { %775 = vmatpush.bf16.msrb.mxu0 %v1608_v28 }
 0x9d9   :  { %633 = vmatpush.bf16.msra.mxu3 %v584_v11 }
 0x9db   :  { %662 = vmatpush.bf16.msrb.mxu1 %v1611_v30  ;;  %719 = vmatpush.bf16.msrb.mxu2 %v1611_v30 }
 0x9dc   :  { %776 = vmatpush.bf16.msrb.mxu0 %v1611_v30 }
 0x9e0   :  { %946 = vmatpush.bf16.msra.mxu0 %v1608_v28 }
 0x9e4   :  { %947 = vmatpush.bf16.msra.mxu0 %v1611_v30 }
 0xa33   :  { %v394_v35 = vpop.permute.xlu1 %393 }
 0xa34   :  { %v396_v37 = vmul.f32 %v394_v35, %v388_v36 }
 0xa36   :  { %398 = vrot.lane.b32.xlu2 %v396_v37, %s1423_s21 }
 0xa3f   :  { %v122_v32 = vpop.f32.mrf.mxu0 }
 0xa40   :  { %v123_v33 = vadd.f32 %v1505_v16, %v122_v32 }
 0xa90   :  { %v399_v39 = vpop.permute.xlu2 %398 }
 0xa91   :  { %v401_v40 = vadd.f32 %v399_v39, %v391_v38  ;;  %v1628_v38 = vld [vmem:[#allocation5 + $0x1] ss:$0 sm:$0xff] }
 0xa93   :  { %1247 = vtanh.f32 %v401_v40 }
 0xa99   :  { %v1248_v41 = vpop.eup %1247 }
 0xa9a   :  { %404 = vrot.lane.b32.xlu0 %v1248_v41, %s1423_s21 }
 0xb0c   :  { %v405_v44 = vpop.permute.xlu0 %404 }
 0xb0d   :  { %v1567_v45 = vmul.f32 %v405_v44, %v388_v36 }
 0xb0f   :  { %v408_v46 = vpack.c.bf16 %v1567_v45, %v1567_v45 }
 0xb11   :  { %410 = vrot.lane.b32.xlu1 %v408_v46, %s1424_s22 }
 0xb83   :  { %v411_v47 = vpop.permute.xlu1 %410 }
 0xb84   :  { %1166 = vmatmul.msk.bf16.vlgmr.msrb.gmra.mxu3 %vm85_vm0, %v411_v47 }
 0xc07   :  { %v424_v50 = vpop.f32.mrf.mxu3 }
 0xc08   :  { %v425_v51 = vadd.f32 %v424_v50, %v120_v49 }
 0xc0a   :  { %1249 = vtanh.f32 %v425_v51  ;;  %v1167_v54 = vmul.f32 -1.442695, %v425_v51 }
 0xc0c   :  { %1251 = vpow2.f32 %v1167_v54 }
 0xc0f   :  { %v426_v52 = vpop.f32.mrf.mxu3 }
 0xc10   :  { %v1250_v53 = vpop.eup %1249 }
 0xc11   :  { %450 = vrot.lane.b32.xlu2 %v1250_v53, %s1423_s21 }
 0xc12   :  { %v1252_v55 = vpop.eup %1251 }
 0xc13   :  { %v431_v56 = vadd.f32 1.0, %v1252_v55 }
 0xc15   :  { %1253 = vrcp.f32 %v431_v56  ;;  %v443_v62 = vand.u32 2147483648, %v431_v56  ;;  %vm437_vm7 = vweird.f32 %v431_v56  ;;  %v441_v63 = vand.u32 2147483647, %v431_v56 }
 0xc17   :  { %v444_v1 = vor.u32 1.1754944e-38, %v443_v62  ;;  %vm442_vm9 = vcmp.eq.f32.partialorder %v441_v63, 8.507059e+37 }
 0xc1b   :  { %v1254_v57 = vpop.eup %1253 }
 0xc1c   :  { %v433_v58 = vmul.f32 %v1254_v57, %v431_v56  ;;  %vm438_vm6 = vweird.f32 %v1254_v57 }
 0xc1d   :  { %vm439_vm8 = vmor %vm437_vm7, %vm438_vm6 }
 0xc1e   :  { %v434_v59 = vsub.f32 1.0, %v433_v58 }
 0xc20   :  { %v435_v60 = vmul.f32 %v1254_v57, %v434_v59 }
 0xc22   :  { %v436_v61 = vadd.f32 %v1254_v57, %v435_v60 }
 0xc24   :  { %v440_v0 = vsel %vm439_vm8, %v1254_v57, %v436_v61 }
 0xc25   :  { %v445_v3 = vsel %vm442_vm9, %v444_v1, %v440_v0 }
 0xc26   :  { %v448_v10 = vmul.f32 %v445_v3, %v401_v40 }
 0xc6b   :  { %v451_v2 = vpop.permute.xlu2 %450 }
 0xc6c   :  { %v453_v4 = vmul.f32 %v451_v2, %v445_v3 }
 0xc6e   :  { %455 = vrot.lane.b32.xlu0 %v453_v4, %s1423_s21 }
 0xc76   :  { %606 = vrot.lane.b32.xlu0 %v595_v5, %s1424_s22 }
 0xce0   :  { %v456_v13 = vpop.permute.xlu0 %455 }
 0xce1   :  { %v1591_v14 = vadd.f32 %v456_v13, %v448_v10 }
 0xce3   :  { %1255 = vtanh.f32 %v1591_v14 }
 0xce8   :  { %v607_v17 = vpop.permute.xlu0 %606 }
 0xce9   :  { %v1256_v18 = vpop.eup %1255  ;;  %1176 = vmatmul.msk.bf16.vlgmr.msra.gmra.mxu3 %vm85_vm0, %v607_v17 }
 0xcea   :  { %461 = vrot.lane.b32.xlu1 %v1256_v18, %s1423_s21 }
 0xd5c   :  { %v462_v22 = vpop.permute.xlu1 %461 }
 0xd5d   :  { %v1603_v23 = vmul.f32 %v462_v22, %v445_v3 }
 0xd5f   :  { %v465_v24 = vpack.c.bf16 %v1603_v23, %v1603_v23 }
 0xd61   :  { %467 = vrot.lane.b32.xlu2 %v465_v24, %s1424_s22 }
 0xd6c   :  { %v635_v39 = vpop.f32.mrf.mxu3 }
 0xd6d   :  { %v636_v40 = vadd.f32 %v1628_v38, %v635_v39 }
 0xdbb   :  { %v468_v31 = vpop.permute.xlu2 %467 }
 0xdbc   :  { %1168 = vmatmul.msk.bf16.vlgmr.msra.gmra.mxu1 %vm85_vm0, %v468_v31 }
 0xdbd   :  { %832 = vmatpush.bf16.msra.mxu1 %v1608_v28 }
 0xdc1   :  { %833 = vmatpush.bf16.msra.mxu1 %v1611_v30 }
 0xdcc   :  { %663 = vmatmul.bf16.vlgmr.msrb.gmra.mxu1 %v1422_v15 }
 0xdcd   :  { %1003 = vmatpush.bf16.msrb.mxu1 %v1608_v28 }
 0xdd1   :  { %1004 = vmatpush.bf16.msrb.mxu1 %v1611_v30 }
 0xe39   :  { %v481_v34 = vpop.f32.mrf.mxu1 }
 0xe3a   :  { %v482_v35 = vadd.f32 %v481_v34, %v123_v33 }
 0xe3c   :  { %1257 = vtanh.f32 %v482_v35  ;;  %v1169_v47 = vmul.f32 -1.442695, %v482_v35  ;;  %v637_v35 = vpop.f32.mrf.mxu3 }
 0xe41   :  { %v483_v36 = vpop.f32.mrf.mxu1 }
 0xe42   :  { %v1258_v37 = vpop.eup %1257  ;;  %v638_v36 = vadd.f32 %v1628_v38, %v637_v35 }
 0xe43   :  { %507 = vrot.lane.b32.xlu1 %v1258_v37, %s1423_s21 }
 0xe49   :  { %v664_v15 = vpop.f32.mrf.mxu1 }
 0xe4a   :  { %v665_v41 = vadd.f32 %v664_v15, %v636_v40 }
 0xe4c   :  { %1259 = vtanh.f32 %v665_v41  ;;  %v1180_v16 = vmul.f32 -1.442695, %v665_v41  ;;  %v596_v41 = vpack.c.bf16 %v1557_v12, %v1540_v42 }
 0xe4e   :  { %1261 = vpow2.f32 %v1180_v16 }
 0xe4f   :  { %1263 = vpow2.f32 %v1169_v47 }
 0xe51   :  { %v666_v44 = vpop.f32.mrf.mxu1 }
 0xe52   :  { %v1260_v46 = vpop.eup %1259 }
 0xe53   :  { %690 = vrot.lane.b32.xlu2 %v1260_v46, %s1423_s21 }
 0xe54   :  { %v1262_v48 = vpop.eup %1261 }
 0xe55   :  { %v671_v49 = vadd.f32 1.0, %v1262_v48  ;;  %v1264_v50 = vpop.eup %1263 }
 0xe56   :  { %v488_v51 = vadd.f32 1.0, %v1264_v50 }
 0xe57   :  { %1265 = vrcp.f32 %v671_v49  ;;  %v683_v60 = vand.u32 2147483648, %v671_v49  ;;  %vm677_vm11 = vweird.f32 %v671_v49  ;;  %v681_v61 = vand.u32 2147483647, %v671_v49 }
 0xe58   :  { %1267 = vrcp.f32 %v488_v51  ;;  %v500_v5 = vand.u32 2147483648, %v488_v51  ;;  %vm494_vm15 = vweird.f32 %v488_v51  ;;  %v498_v6 = vand.u32 2147483647, %v488_v51 }
 0xe59   :  { %v684_v0 = vor.u32 1.1754944e-38, %v683_v60  ;;  %vm682_vm13 = vcmp.eq.f32.partialorder %v681_v61, 8.507059e+37 }
 0xe5a   :  { %v501_v8 = vor.u32 1.1754944e-38, %v500_v5  ;;  %vm499_vm2 = vcmp.eq.f32.partialorder %v498_v6, 8.507059e+37 }
 0xe5d   :  { %v1266_v52 = vpop.eup %1265 }
 0xe5e   :  { %v673_v53 = vmul.f32 %v1266_v52, %v671_v49  ;;  %v1268_v55 = vpop.eup %1267  ;;  %vm678_vm10 = vweird.f32 %v1266_v52 }
 0xe5f   :  { %v490_v57 = vmul.f32 %v1268_v55, %v488_v51  ;;  %vm679_vm12 = vmor %vm677_vm11, %vm678_vm10  ;;  %vm495_vm14 = vweird.f32 %v1268_v55 }
 0xe60   :  { %v674_v54 = vsub.f32 1.0, %v673_v53  ;;  %vm496_vm1 = vmor %vm494_vm15, %vm495_vm14 }
 0xe61   :  { %v491_v59 = vsub.f32 1.0, %v490_v57 }
 0xe62   :  { %v675_v56 = vmul.f32 %v1266_v52, %v674_v54 }
 0xe63   :  { %v492_v63 = vmul.f32 %v1268_v55, %v491_v59 }
 0xe64   :  { %v676_v58 = vadd.f32 %v1266_v52, %v675_v56 }
 0xe65   :  { %v493_v4 = vadd.f32 %v1268_v55, %v492_v63 }
 0xe66   :  { %v680_v62 = vsel %vm679_vm12, %v1266_v52, %v676_v58 }
 0xe67   :  { %v685_v2 = vsel %vm682_vm13, %v684_v0, %v680_v62  ;;  %v497_v7 = vsel %vm496_vm1, %v1268_v55, %v493_v4  ;;  %v1664_v0 = vpop.f32.mrf.mxu0 }
 0xe68   :  { %v502_v43 = vsel %vm499_vm2, %v501_v8, %v497_v7  ;;  %v688_v10 = vmul.f32 0.0, %v685_v2 }
 0xe69   :  { %v505_v18 = vmul.f32 %v502_v43, %v1591_v14 }
 0xead   :  { %v691_v1 = vpop.permute.xlu2 %690 }
 0xeae   :  { %v693_v3 = vmul.f32 %v691_v1, %v685_v2 }
 0xeb0   :  { %695 = vrot.lane.b32.xlu1 %v693_v3, %s1423_s21 }
 0xeb5   :  { %v508_v9 = vpop.permute.xlu1 %507 }
 0xeb6   :  { %v510_v11 = vmul.f32 %v508_v9, %v502_v43 }
 0xeb8   :  { %512 = vrot.lane.b32.xlu0 %v510_v11, %s1423_s21 }
 0xf22   :  { %v696_v13 = vpop.permute.xlu1 %695 }
 0xf23   :  { %v698_v17 = vadd.f32 %v696_v13, %v688_v10 }
 0xf25   :  { %1269 = vtanh.f32 %v698_v17 }
 0xf2a   :  { %v513_v19 = vpop.permute.xlu0 %512 }
 0xf2b   :  { %v1270_v20 = vpop.eup %1269  ;;  %v1635_v21 = vadd.f32 %v513_v19, %v505_v18 }
 0xf2c   :  { %701 = vrot.lane.b32.xlu0 %v1270_v20, %s1423_s21 }
 0xf2d   :  { %1271 = vtanh.f32 %v1635_v21 }
 0xf33   :  { %v1272_v22 = vpop.eup %1271 }
 0xf34   :  { %518 = vrot.lane.b32.xlu2 %v1272_v22, %s1423_s21 }
 0xf8e   :  { %v519_v24 = vpop.permute.xlu2 %518 }
 0xf8f   :  { %v1640_v25 = vmul.f32 %v519_v24, %v502_v43 }
 0xf91   :  { %v522_v26 = vpack.c.bf16 %v1640_v25, %v1640_v25 }
 0xf93   :  { %524 = vrot.lane.b32.xlu1 %v522_v26, %s1424_s22 }
 0xf9e   :  { %v702_v14 = vpop.permute.xlu0 %701 }
 0xf9f   :  { %v704_v27 = vmul.f32 %v702_v14, %v685_v2 }
 0xfa1   :  { %v705_v29 = vpack.c.bf16 %v704_v27, %v704_v27 }
 0xfa3   :  { %707 = vrot.lane.b32.xlu2 %v705_v29, %s1424_s22 }
 0xffd   :  { %v708_v32 = vpop.permute.xlu2 %707 }
0x1005   :  { %v525_v31 = vpop.permute.xlu1 %524 }
0x1006   :  { %1170 = vmatmul.msk.bf16.vlgmr.msra.gmra.mxu2 %vm85_vm0, %v525_v31 }
0x1007   :  { %889 = vmatpush.bf16.msra.mxu2 %v1608_v28 }
0x100b   :  { %890 = vmatpush.bf16.msra.mxu2 %v1611_v30 }
0x1016   :  { %1181 = vmatmul.msk.bf16.vlgmr.msrb.gmra.mxu2 %vm85_vm0, %v708_v32 }
0x1017   :  { %1060 = vmatpush.bf16.msrb.mxu2 %v1608_v28 }
0x101b   :  { %1061 = vmatpush.bf16.msrb.mxu2 %v1611_v30 }
0x1089   :  { %v1652_v33 = vpop.f32.mrf.mxu2 }
0x1091   :  { %v540_v34 = vpop.f32.mrf.mxu2 }
0x1099   :  { %v721_v37 = vpop.f32.mrf.mxu2 }
0x109a   :  { %v722_v39 = vadd.f32 %v721_v37, %v638_v36 }
0x109c   :  { %1273 = vtanh.f32 %v722_v39  ;;  %v1182_v28 = vmul.f32 -1.442695, %v722_v39 }
0x109e   :  { %1275 = vpow2.f32 %v1182_v28 }
0x10a1   :  { %v723_v40 = vpop.f32.mrf.mxu2 }
0x10a2   :  { %v1274_v15 = vpop.eup %1273 }
0x10a3   :  { %747 = vrot.lane.b32.xlu0 %v1274_v15, %s1423_s21 }
0x10a4   :  { %v1276_v30 = vpop.eup %1275 }
0x10a5   :  { %v728_v44 = vadd.f32 1.0, %v1276_v30 }
0x10a7   :  { %1277 = vrcp.f32 %v728_v44  ;;  %v740_v50 = vand.u32 2147483648, %v728_v44  ;;  %vm734_vm4 = vweird.f32 %v728_v44  ;;  %v738_v51 = vand.u32 2147483647, %v728_v44 }
0x10a9   :  { %v741_v53 = vor.u32 1.1754944e-38, %v740_v50  ;;  %vm739_vm6 = vcmp.eq.f32.partialorder %v738_v51, 8.507059e+37 }
0x10ab   :  { %608 = vrot.lane.b32.xlu0 %v596_v41, %s1424_s22 }
0x10ad   :  { %v1278_v46 = vpop.eup %1277 }
0x10ae   :  { %v730_v16 = vmul.f32 %v1278_v46, %v728_v44  ;;  %vm735_vm3 = vweird.f32 %v1278_v46  ;;  %v597_v44 = vpack.c.bf16 %v1603_v23, %v1567_v45 }
0x10af   :  { %vm736_vm5 = vmor %vm734_vm4, %vm735_vm3 }
0x10b0   :  { %v731_v47 = vsub.f32 1.0, %v730_v16 }
0x10b2   :  { %v732_v48 = vmul.f32 %v1278_v46, %v731_v47 }
0x10b4   :  { %v733_v49 = vadd.f32 %v1278_v46, %v732_v48 }
0x10b6   :  { %v737_v52 = vsel %vm736_vm5, %v1278_v46, %v733_v49 }
0x10b7   :  { %v742_v12 = vsel %vm739_vm6, %v741_v53, %v737_v52 }
0x10b8   :  { %v745_v56 = vmul.f32 %v742_v12, %v698_v17 }
0x1115   :  { %v748_v42 = vpop.permute.xlu0 %747 }
0x1116   :  { %v750_v54 = vmul.f32 %v748_v42, %v742_v12 }
0x1118   :  { %752 = vrot.lane.b32.xlu1 %v750_v54, %s1423_s21 }
0x111d   :  { %v609_v55 = vpop.permute.xlu0 %608 }
0x111e   :  { %1177 = vmatmul.msk.bf16.gmra.mxu3 %vm85_vm0, %v609_v55 }
0x118a   :  { %v753_v57 = vpop.permute.xlu1 %752 }
0x118b   :  { %v755_v58 = vadd.f32 %v753_v57, %v745_v56 }
0x118d   :  { %1279 = vtanh.f32 %v755_v58 }
0x1193   :  { %v1280_v59 = vpop.eup %1279 }
0x1194   :  { %758 = vrot.lane.b32.xlu2 %v1280_v59, %s1423_s21 }
0x11a1   :  { %v640_v1 = vpop.f32.mrf.mxu3 }
0x11a2   :  { %v641_v2 = vadd.f32 %v1628_v38, %v640_v1 }
0x11a9   :  { %v642_v39 = vpop.f32.mrf.mxu3 }
0x11aa   :  { %v643_v40 = vadd.f32 %v1628_v38, %v642_v39 }
0x11ee   :  { %v759_v60 = vpop.permute.xlu2 %758 }
0x11ef   :  { %v761_v61 = vmul.f32 %v759_v60, %v742_v12 }
0x11f1   :  { %v762_v62 = vpack.c.bf16 %v761_v61, %v761_v61 }
0x11f3   :  { %764 = vrot.lane.b32.xlu1 %v762_v62, %s1424_s22 }
0x1265   :  { %v765_v63 = vpop.permute.xlu1 %764 }
0x1266   :  { %1183 = vmatmul.msk.bf16.vlgmr.msrb.gmra.mxu0 %vm85_vm0, %v765_v63 }
0x12e3   :  { %v778_v3 = vpop.f32.mrf.mxu0 }
0x12e4   :  { %v779_v4 = vadd.f32 %v778_v3, %v641_v2 }
0x12e6   :  { %1281 = vtanh.f32 %v779_v4  ;;  %v1184_v7 = vmul.f32 -1.442695, %v779_v4 }
0x12e8   :  { %1283 = vpow2.f32 %v1184_v7 }
0x12eb   :  { %v780_v5 = vpop.f32.mrf.mxu0 }
0x12ec   :  { %v1282_v6 = vpop.eup %1281 }
0x12ed   :  { %804 = vrot.lane.b32.xlu2 %v1282_v6, %s1423_s21 }
0x12ee   :  { %v1284_v8 = vpop.eup %1283 }
0x12ef   :  { %v785_v9 = vadd.f32 1.0, %v1284_v8 }
0x12f1   :  { %1285 = vrcp.f32 %v785_v9  ;;  %v797_v18 = vand.u32 2147483648, %v785_v9  ;;  %vm791_vm8 = vweird.f32 %v785_v9  ;;  %v795_v19 = vand.u32 2147483647, %v785_v9 }
0x12f3   :  { %v798_v22 = vor.u32 1.1754944e-38, %v797_v18  ;;  %vm796_vm10 = vcmp.eq.f32.partialorder %v795_v19, 8.507059e+37 }
0x12f7   :  { %v1286_v43 = vpop.eup %1285 }
0x12f8   :  { %v787_v11 = vmul.f32 %v1286_v43, %v785_v9  ;;  %vm792_vm7 = vweird.f32 %v1286_v43 }
0x12f9   :  { %vm793_vm9 = vmor %vm791_vm8, %vm792_vm7 }
0x12fa   :  { %v788_v10 = vsub.f32 1.0, %v787_v11 }
0x12fc   :  { %v789_v13 = vmul.f32 %v1286_v43, %v788_v10 }
0x12fe   :  { %v790_v17 = vadd.f32 %v1286_v43, %v789_v13 }
0x1300   :  { %v794_v20 = vsel %vm793_vm9, %v1286_v43, %v790_v17 }
0x1301   :  { %v799_v26 = vsel %vm796_vm10, %v798_v22, %v794_v20 }
0x1302   :  { %v802_v27 = vmul.f32 %v799_v26, %v755_v58 }
0x1347   :  { %v805_v24 = vpop.permute.xlu2 %804 }
0x1348   :  { %v807_v14 = vmul.f32 %v805_v24, %v799_v26  ;;  %v1337_v24 = vld [vmem:[#allocation5] ss:$0 sm:$0xff] }
0x134a   :  { %809 = vrot.lane.b32.xlu0 %v807_v14, %s1423_s21 }
0x13bc   :  { %v810_v29 = vpop.permute.xlu0 %809 }
0x13bd   :  { %v812_v31 = vadd.f32 %v810_v29, %v802_v27 }
0x13bf   :  { %1287 = vtanh.f32 %v812_v31 }
0x13c5   :  { %v1288_v32 = vpop.eup %1287 }
0x13c6   :  { %815 = vrot.lane.b32.xlu1 %v1288_v32, %s1423_s21 }
0x1438   :  { %v816_v34 = vpop.permute.xlu1 %815 }
0x1439   :  { %v818_v35 = vmul.f32 %v816_v34, %v799_v26  ;;  %v125_v26 = vadd.f32 %v1337_v24, %v1664_v0 }
0x143b   :  { %v819_v36 = vpack.c.bf16 %v818_v35, %v818_v35  ;;  %v539_v27 = vadd.f32 %v1652_v33, %v125_v26 }
0x143d   :  { %821 = vrot.lane.b32.xlu2 %v819_v36, %s1424_s22  ;;  %v1171_v39 = vmul.f32 -1.442695, %v539_v27 }
0x1497   :  { %v822_v37 = vpop.permute.xlu2 %821 }
0x1498   :  { %1185 = vmatmul.msk.bf16.vlgmr.msra.gmra.mxu1 %vm85_vm0, %v822_v37 }
0x1515   :  { %v835_v15 = vpop.f32.mrf.mxu1 }
0x1516   :  { %v836_v41 = vadd.f32 %v835_v15, %v643_v40 }
0x1518   :  { %1289 = vtanh.f32 %v836_v41  ;;  %v1186_v46 = vmul.f32 -1.442695, %v836_v41 }
0x151a   :  { %1291 = vpow2.f32 %v1186_v46 }
0x151d   :  { %v837_v28 = vpop.f32.mrf.mxu1 }
0x151e   :  { %v1290_v30 = vpop.eup %1289 }
0x151f   :  { %861 = vrot.lane.b32.xlu0 %v1290_v30, %s1423_s21 }
0x1520   :  { %v1292_v16 = vpop.eup %1291 }
0x1521   :  { %v842_v47 = vadd.f32 1.0, %v1292_v16 }
0x1523   :  { %1293 = vrcp.f32 %v842_v47  ;;  %v854_v53 = vand.u32 2147483648, %v842_v47  ;;  %vm848_vm12 = vweird.f32 %v842_v47  ;;  %v852_v42 = vand.u32 2147483647, %v842_v47 }
0x1525   :  { %v855_v54 = vor.u32 1.1754944e-38, %v854_v53  ;;  %vm853_vm14 = vcmp.eq.f32.partialorder %v852_v42, 8.507059e+37 }
0x1527   :  { %610 = vrot.lane.b32.xlu0 %v597_v44, %s1424_s22 }
0x1529   :  { %v1294_v48 = vpop.eup %1293 }
0x152a   :  { %v844_v49 = vmul.f32 %v1294_v48, %v842_v47  ;;  %vm849_vm11 = vweird.f32 %v1294_v48 }
0x152b   :  { %vm850_vm13 = vmor %vm848_vm12, %vm849_vm11 }
0x152c   :  { %v845_v50 = vsub.f32 1.0, %v844_v49 }
0x152e   :  { %v846_v51 = vmul.f32 %v1294_v48, %v845_v50 }
0x1530   :  { %v847_v52 = vadd.f32 %v1294_v48, %v846_v51 }
0x1532   :  { %v851_v12 = vsel %vm850_vm13, %v1294_v48, %v847_v52 }
0x1533   :  { %v856_v23 = vsel %vm853_vm14, %v855_v54, %v851_v12 }
0x1534   :  { %v859_v57 = vmul.f32 %v856_v23, %v812_v31 }
0x1591   :  { %v862_v45 = vpop.permute.xlu0 %861 }
0x1592   :  { %v864_v55 = vmul.f32 %v862_v45, %v856_v23 }
0x1594   :  { %866 = vrot.lane.b32.xlu1 %v864_v55, %s1423_s21 }
0x1599   :  { %v611_v56 = vpop.permute.xlu0 %610 }
0x159a   :  { %1178 = vmatmul.msk.bf16.gmra.mxu3 %vm85_vm0, %v611_v56 }
0x1606   :  { %v867_v58 = vpop.permute.xlu1 %866 }
0x1607   :  { %v869_v59 = vadd.f32 %v867_v58, %v859_v57 }
0x1609   :  { %1295 = vtanh.f32 %v869_v59 }
0x160f   :  { %v1296_v60 = vpop.eup %1295 }
0x1610   :  { %872 = vrot.lane.b32.xlu2 %v1296_v60, %s1423_s21 }
0x161d   :  { %v645_v2 = vpop.f32.mrf.mxu3 }
0x161e   :  { %v646_v3 = vadd.f32 %v1628_v38, %v645_v2 }
0x1625   :  { %v647_v54 = vpop.f32.mrf.mxu3 }
0x1626   :  { %v648_v45 = vadd.f32 %v1628_v38, %v647_v54 }
0x166a   :  { %v873_v61 = vpop.permute.xlu2 %872 }
0x166b   :  { %v875_v62 = vmul.f32 %v873_v61, %v856_v23 }
0x166d   :  { %v876_v63 = vpack.c.bf16 %v875_v62, %v875_v62 }
0x166f   :  { %878 = vrot.lane.b32.xlu1 %v876_v63, %s1424_s22 }
0x16e1   :  { %v879_v1 = vpop.permute.xlu1 %878 }
0x16e2   :  { %1187 = vmatmul.msk.bf16.vlgmr.msra.gmra.mxu2 %vm85_vm0, %v879_v1 }
0x1765   :  { %v892_v4 = vpop.f32.mrf.mxu2 }
0x1766   :  { %v893_v5 = vadd.f32 %v892_v4, %v646_v3 }
0x1768   :  { %1297 = vtanh.f32 %v893_v5  ;;  %v1188_v8 = vmul.f32 -1.442695, %v893_v5 }
0x176a   :  { %1299 = vpow2.f32 %v1188_v8 }
0x176d   :  { %v894_v6 = vpop.f32.mrf.mxu2 }
0x176e   :  { %v1298_v7 = vpop.eup %1297 }
0x176f   :  { %918 = vrot.lane.b32.xlu2 %v1298_v7, %s1423_s21 }
0x1770   :  { %v1300_v9 = vpop.eup %1299 }
0x1771   :  { %v899_v43 = vadd.f32 1.0, %v1300_v9 }
0x1773   :  { %1301 = vrcp.f32 %v899_v43  ;;  %v911_v19 = vand.u32 2147483648, %v899_v43  ;;  %vm905_vm1 = vweird.f32 %v899_v43  ;;  %v909_v20 = vand.u32 2147483647, %v899_v43 }
0x1774   :  { %1303 = vtanh.f32 %v539_v27 }
0x1775   :  { %v912_v14 = vor.u32 1.1754944e-38, %v911_v19  ;;  %vm910_vm3 = vcmp.eq.f32.partialorder %v909_v20, 8.507059e+37 }
0x1779   :  { %v1302_v11 = vpop.eup %1301 }
0x177a   :  { %v901_v10 = vmul.f32 %v1302_v11, %v899_v43  ;;  %vm906_vm15 = vweird.f32 %v1302_v11  ;;  %v1304_v34 = vpop.eup %1303 }
0x177b   :  { %vm907_vm2 = vmor %vm905_vm1, %vm906_vm15 }
0x177c   :  { %v902_v13 = vsub.f32 1.0, %v901_v10 }
0x177e   :  { %v903_v17 = vmul.f32 %v1302_v11, %v902_v13 }
0x1780   :  { %v904_v18 = vadd.f32 %v1302_v11, %v903_v17 }
0x1782   :  { %v908_v22 = vsel %vm907_vm2, %v1302_v11, %v904_v18 }
0x1783   :  { %v913_v31 = vsel %vm910_vm3, %v912_v14, %v908_v22 }
0x1784   :  { %v916_v35 = vmul.f32 %v913_v31, %v869_v59 }
0x17c9   :  { %v919_v29 = vpop.permute.xlu2 %918 }
0x17ca   :  { %v921_v32 = vmul.f32 %v919_v29, %v913_v31 }
0x17cc   :  { %923 = vrot.lane.b32.xlu0 %v921_v32, %s1423_s21 }
0x17d4   :  { %564 = vrot.lane.b32.xlu0 %v1304_v34, %s1423_s21 }
0x183e   :  { %v924_v36 = vpop.permute.xlu0 %923 }
0x183f   :  { %v1688_v37 = vadd.f32 %v924_v36, %v916_v35 }
0x1841   :  { %1305 = vtanh.f32 %v1688_v37 }
0x1842   :  { %1307 = vpow2.f32 %v1171_v39 }
0x1846   :  { %v565_v52 = vpop.permute.xlu0 %564 }
0x1847   :  { %v1306_v0 = vpop.eup %1305 }
0x1848   :  { %929 = vrot.lane.b32.xlu1 %v1306_v0, %s1423_s21  ;;  %v1308_v33 = vpop.eup %1307 }
0x1849   :  { %v545_v40 = vadd.f32 1.0, %v1308_v33 }
0x184b   :  { %1309 = vrcp.f32 %v545_v40  ;;  %v557_v48 = vand.u32 2147483648, %v545_v40  ;;  %vm551_vm5 = vweird.f32 %v545_v40  ;;  %v555_v49 = vand.u32 2147483647, %v545_v40 }
0x184d   :  { %v558_v51 = vor.u32 1.1754944e-38, %v557_v48  ;;  %vm556_vm7 = vcmp.eq.f32.partialorder %v555_v49, 8.507059e+37 }
0x1851   :  { %v1310_v15 = vpop.eup %1309 }
0x1852   :  { %v547_v41 = vmul.f32 %v1310_v15, %v545_v40  ;;  %vm552_vm4 = vweird.f32 %v1310_v15 }
0x1853   :  { %vm553_vm6 = vmor %vm551_vm5, %vm552_vm4 }
0x1854   :  { %v548_v28 = vsub.f32 1.0, %v547_v41 }
0x1856   :  { %v549_v30 = vmul.f32 %v1310_v15, %v548_v28 }
0x1858   :  { %v550_v16 = vadd.f32 %v1310_v15, %v549_v30 }
0x185a   :  { %v554_v50 = vsel %vm553_vm6, %v1310_v15, %v550_v16 }
0x185b   :  { %v559_v53 = vsel %vm556_vm7, %v558_v51, %v554_v50 }
0x185c   :  { %v567_v42 = vmul.f32 %v565_v52, %v559_v53  ;;  %v562_v57 = vmul.f32 %v559_v53, %v1635_v21 }
0x18ba   :  { %v930_v44 = vpop.permute.xlu1 %929 }
0x18bb   :  { %v932_v46 = vmul.f32 %v930_v44, %v913_v31 }
0x18bd   :  { %v933_v47 = vpack.c.bf16 %v932_v46, %v932_v46 }
0x18bf   :  { %935 = vrot.lane.b32.xlu2 %v933_v47, %s1424_s22 }
0x18c7   :  { %569 = vrot.lane.b32.xlu2 %v567_v42, %s1423_s21 }
0x1919   :  { %v936_v12 = vpop.permute.xlu2 %935 }
0x191a   :  { %1189 = vmatmul.msk.bf16.vlgmr.msra.gmra.mxu0 %vm85_vm0, %v936_v12 }
0x1921   :  { %v570_v56 = vpop.permute.xlu2 %569 }
0x1922   :  { %v572_v58 = vadd.f32 %v570_v56, %v562_v57 }
0x1997   :  { %v949_v23 = vpop.f32.mrf.mxu0 }
0x1998   :  { %v950_v55 = vadd.f32 %v949_v23, %v648_v45 }
0x199a   :  { %1311 = vtanh.f32 %v950_v55  ;;  %v1190_v62 = vmul.f32 -1.442695, %v950_v55 }
0x199b   :  { %1313 = vtanh.f32 %v572_v58 }
0x199c   :  { %1315 = vpow2.f32 %v1190_v62 }
0x199f   :  { %v951_v59 = vpop.f32.mrf.mxu0 }
0x19a0   :  { %v1312_v60 = vpop.eup %1311 }
0x19a1   :  { %975 = vrot.lane.b32.xlu1 %v1312_v60, %s1423_s21  ;;  %v1314_v61 = vpop.eup %1313 }
0x19a2   :  { %v1316_v63 = vpop.eup %1315 }
0x19a3   :  { %v956_v1 = vadd.f32 1.0, %v1316_v63 }
0x19a5   :  { %1317 = vrcp.f32 %v956_v1  ;;  %v968_v21 = vand.u32 2147483648, %v956_v1  ;;  %vm962_vm9 = vweird.f32 %v956_v1  ;;  %v966_v7 = vand.u32 2147483647, %v956_v1 }
0x19a7   :  { %v969_v9 = vor.u32 1.1754944e-38, %v968_v21  ;;  %vm967_vm11 = vcmp.eq.f32.partialorder %v966_v7, 8.507059e+37 }
0x19a9   :  { %575 = vrot.lane.b32.xlu1 %v1314_v61, %s1423_s21 }
0x19ab   :  { %v1318_v2 = vpop.eup %1317 }
0x19ac   :  { %v958_v3 = vmul.f32 %v1318_v2, %v956_v1  ;;  %vm963_vm8 = vweird.f32 %v1318_v2 }
0x19ad   :  { %vm964_vm10 = vmor %vm962_vm9, %vm963_vm8 }
0x19ae   :  { %v959_v4 = vsub.f32 1.0, %v958_v3 }
0x19b0   :  { %v960_v5 = vmul.f32 %v1318_v2, %v959_v4 }
0x19b2   :  { %v961_v6 = vadd.f32 %v1318_v2, %v960_v5 }
0x19b4   :  { %v965_v8 = vsel %vm964_vm10, %v1318_v2, %v961_v6 }
0x19b5   :  { %v970_v11 = vsel %vm967_vm11, %v969_v9, %v965_v8 }
0x19b6   :  { %v973_v19 = vmul.f32 %v970_v11, %v1688_v37 }
0x1a13   :  { %v976_v43 = vpop.permute.xlu1 %975 }
0x1a14   :  { %v978_v10 = vmul.f32 %v976_v43, %v970_v11 }
0x1a16   :  { %980 = vrot.lane.b32.xlu0 %v978_v10, %s1423_s21 }
0x1a1b   :  { %v576_v13 = vpop.permute.xlu1 %575 }
0x1a1c   :  { %v578_v17 = vmul.f32 %v576_v13, %v559_v53 }
0x1a1e   :  { %v598_v18 = vpack.c.bf16 %v578_v17, %v1640_v25 }
0x1a20   :  { %612 = vrot.lane.b32.xlu0 %v598_v18, %s1424_s22  ;;  %v1107_v18 = vld [vmem:[%s1741_s4 + $0x10] sm:$0xff] }
0x1a88   :  { %v981_v20 = vpop.permute.xlu0 %980 }
0x1a89   :  { %v983_v22 = vadd.f32 %v981_v20, %v973_v19  ;;  %v1108_v19 = vld [vmem:[%s1741_s4 + $0x18] sm:$0xff]  ;;  %v1105_v20 = vld [vmem:[%s1741_s4] sm:$0xff] }
0x1a8b   :  { %1319 = vtanh.f32 %v983_v22 }
0x1a91   :  { %v1320_v24 = vpop.eup %1319 }
0x1a92   :  { %986 = vrot.lane.b32.xlu2 %v1320_v24, %s1423_s21  ;;  %v613_v26 = vpop.permute.xlu0 %612  ;;  %v1106_v24 = vld [vmem:[%s1741_s4 + $0x8] sm:$0xff]  ;;  %s1142_s4 = sshll.u32 %s1743_s6, 4  ;;  %s1143_s4 = int_to_ptr.hbm [resolvable:$true] %s1142_s4 }
0x1a93   :  { %1179 = vmatmul.msk.bf16.gmra.mxu3 %vm85_vm0, %v613_v26  ;;  %v1109_v26 = vpack.c.bf16 %v1106_v24, %v1105_v20 }
0x1aec   :  { %v987_v14 = vpop.permute.xlu2 %986 }
0x1aed   :  { %v989_v27 = vmul.f32 %v987_v14, %v970_v11 }
0x1aef   :  { %v990_v29 = vpack.c.bf16 %v989_v27, %v989_v27 }
0x1af1   :  { %992 = vrot.lane.b32.xlu1 %v990_v29, %s1424_s22 }
0x1b16   :  { %v650_v25 = vpop.f32.mrf.mxu3 }
0x1b17   :  { %v651_v32 = vadd.f32 %v1628_v38, %v650_v25  ;;  %v1208_v25 = vld [vmem:[%s1742_s5] ss:$0 sm:$0xff] }
0x1b1e   :  { %v652_v55 = vpop.f32.mrf.mxu3 }
0x1b1f   :  { %v653_v56 = vadd.f32 %v1628_v38, %v652_v55 }
0x1b63   :  { %v993_v31 = vpop.permute.xlu1 %992 }
0x1b64   :  { %1191 = vmatmul.msk.bf16.vlgmr.msrb.gmra.mxu1 %vm85_vm0, %v993_v31 }
0x1be1   :  { %v1006_v34 = vpop.f32.mrf.mxu1 }
0x1be2   :  { %v1007_v35 = vadd.f32 %v1006_v34, %v651_v32 }
0x1be4   :  { %1321 = vtanh.f32 %v1007_v35  ;;  %v1192_v0 = vmul.f32 -1.442695, %v1007_v35 }
0x1be6   :  { %1323 = vpow2.f32 %v1192_v0 }
0x1be9   :  { %v1008_v36 = vpop.f32.mrf.mxu1 }
0x1bea   :  { %v1322_v37 = vpop.eup %1321 }
0x1beb   :  { %1032 = vrot.lane.b32.xlu2 %v1322_v37, %s1423_s21 }
0x1bec   :  { %v1324_v39 = vpop.eup %1323 }
0x1bed   :  { %v1013_v33 = vadd.f32 1.0, %v1324_v39 }
0x1bef   :  { %1325 = vrcp.f32 %v1013_v33  ;;  %v1025_v44 = vand.u32 2147483648, %v1013_v33  ;;  %vm1019_vm13 = vweird.f32 %v1013_v33  ;;  %v1023_v46 = vand.u32 2147483647, %v1013_v33 }
0x1bf1   :  { %v1026_v47 = vor.u32 1.1754944e-38, %v1025_v44  ;;  %vm1024_vm15 = vcmp.eq.f32.partialorder %v1023_v46, 8.507059e+37 }
0x1bf5   :  { %v1326_v40 = vpop.eup %1325 }
0x1bf6   :  { %v1015_v15 = vmul.f32 %v1326_v40, %v1013_v33  ;;  %vm1020_vm12 = vweird.f32 %v1326_v40 }
0x1bf7   :  { %vm1021_vm14 = vmor %vm1019_vm13, %vm1020_vm12 }
0x1bf8   :  { %v1016_v41 = vsub.f32 1.0, %v1015_v15 }
0x1bfa   :  { %v1017_v28 = vmul.f32 %v1326_v40, %v1016_v41 }
0x1bfc   :  { %v1018_v30 = vadd.f32 %v1326_v40, %v1017_v28 }
0x1bfe   :  { %v1022_v16 = vsel %vm1021_vm14, %v1326_v40, %v1018_v30 }
0x1bff   :  { %v1027_v49 = vsel %vm1024_vm15, %v1026_v47, %v1022_v16 }
0x1c00   :  { %v1030_v51 = vmul.f32 %v1027_v49, %v983_v22  ;;  %v1110_v22 = vpack.c.bf16 %v1108_v19, %v1107_v18 }
0x1c02   :  { %1127 = vmatpush.bf16.msrb.mxu0 %v1110_v22 }
0x1c06   :  { %1128 = vmatpush.bf16.msrb.mxu0 %v1109_v26 }
0x1c45   :  { %v1033_v48 = vpop.permute.xlu2 %1032 }
0x1c46   :  { %v1035_v50 = vmul.f32 %v1033_v48, %v1027_v49 }
0x1c48   :  { %1037 = vrot.lane.b32.xlu0 %v1035_v50, %s1423_s21 }
0x1cba   :  { %v1038_v52 = vpop.permute.xlu0 %1037 }
0x1cbb   :  { %v1040_v53 = vadd.f32 %v1038_v52, %v1030_v51 }
0x1cbd   :  { %1327 = vtanh.f32 %v1040_v53 }
0x1cc3   :  { %v1328_v42 = vpop.eup %1327 }
0x1cc4   :  { %1043 = vrot.lane.b32.xlu1 %v1328_v42, %s1423_s21 }
0x1d36   :  { %v1044_v12 = vpop.permute.xlu1 %1043 }
0x1d37   :  { %v1046_v54 = vmul.f32 %v1044_v12, %v1027_v49 }
0x1d39   :  { %v1047_v45 = vpack.c.bf16 %v1046_v54, %v1046_v54 }
0x1d3b   :  { %1049 = vrot.lane.b32.xlu2 %v1047_v45, %s1424_s22 }
0x1d95   :  { %v1050_v23 = vpop.permute.xlu2 %1049 }
0x1d96   :  { %1193 = vmatmul.msk.bf16.vlgmr.msrb.gmra.mxu2 %vm85_vm0, %v1050_v23 }
0x1e19   :  { %v1063_v57 = vpop.f32.mrf.mxu2 }
0x1e1a   :  { %v1064_v58 = vadd.f32 %v1063_v57, %v653_v56 }
0x1e1c   :  { %1329 = vtanh.f32 %v1064_v58  ;;  %v1194_v61 = vmul.f32 -1.442695, %v1064_v58 }
0x1e1e   :  { %1331 = vpow2.f32 %v1194_v61 }
0x1e21   :  { %v1065_v59 = vpop.f32.mrf.mxu2 }
0x1e22   :  { %v1330_v60 = vpop.eup %1329 }
0x1e23   :  { %1089 = vrot.lane.b32.xlu0 %v1330_v60, %s1423_s21 }
0x1e24   :  { %v1332_v62 = vpop.eup %1331 }
0x1e25   :  { %v1070_v63 = vadd.f32 1.0, %v1332_v62 }
0x1e27   :  { %1333 = vrcp.f32 %v1070_v63  ;;  %v1082_v6 = vand.u32 2147483648, %v1070_v63  ;;  %vm1076_vm2 = vweird.f32 %v1070_v63  ;;  %v1080_v38 = vand.u32 2147483647, %v1070_v63 }
0x1e29   :  { %v1083_v7 = vor.u32 1.1754944e-38, %v1082_v6  ;;  %vm1081_vm4 = vcmp.eq.f32.partialorder %v1080_v38, 8.507059e+37 }
0x1e2d   :  { %v1334_v1 = vpop.eup %1333 }
0x1e2e   :  { %v1072_v2 = vmul.f32 %v1334_v1, %v1070_v63  ;;  %vm1077_vm1 = vweird.f32 %v1334_v1 }
0x1e2f   :  { %vm1078_vm3 = vmor %vm1076_vm2, %vm1077_vm1 }
0x1e30   :  { %v1073_v3 = vsub.f32 1.0, %v1072_v2 }
0x1e32   :  { %v1074_v4 = vmul.f32 %v1334_v1, %v1073_v3 }
0x1e34   :  { %v1075_v5 = vadd.f32 %v1334_v1, %v1074_v4 }
0x1e36   :  { %v1079_v21 = vsel %vm1078_vm3, %v1334_v1, %v1075_v5 }
0x1e37   :  { %v1084_v9 = vsel %vm1081_vm4, %v1083_v7, %v1079_v21 }
0x1e38   :  { %v1087_v11 = vmul.f32 %v1084_v9, %v1040_v53 }
0x1e95   :  { %v1090_v8 = vpop.permute.xlu0 %1089 }
0x1e96   :  { %v1092_v43 = vmul.f32 %v1090_v8, %v1084_v9 }
0x1e98   :  { %1094 = vrot.lane.b32.xlu1 %v1092_v43, %s1423_s21 }
0x1f0a   :  { %v1095_v10 = vpop.permute.xlu1 %1094 }
0x1f0b   :  { %v1097_v13 = vadd.f32 %v1095_v10, %v1087_v11 }
0x1f0d   :  { %1335 = vtanh.f32 %v1097_v13 }
0x1f13   :  { %v1336_v17 = vpop.eup %1335 }
0x1f14   :  { %1100 = vrot.lane.b32.xlu2 %v1336_v17, %s1423_s21 }
0x1f6e   :  { %v1101_v14 = vpop.permute.xlu2 %1100 }
0x1f6f   :  { %v1103_v27 = vmul.f32 %v1101_v14, %v1084_v9 }
0x1f71   :  { %v1104_v29 = vpack.c.bf16 %v1103_v27, %v1103_v27 }
0x1f73   :  { %1116 = vrot.lane.b32.xlu0 %v1104_v29, %s1424_s22 }
0x1fe5   :  { %v1117_v31 = vpop.permute.xlu0 %1116 }
0x1fe6   :  { %1195 = vmatmul.msk.bf16.vlgmr.msrb.gmra.mxu0 %vm85_vm0, %v1117_v31 }
0x2063   :  { %v1130_v32 = vpop.f32.mrf.mxu0 }
0x2064   :  { %v1131_v34 = vadd.f32 %v1208_v25, %v1130_v32 }
0x2066   :  { %1134 = vst [vmem:[#allocation7] sm:$0xff] %v1131_v34 }
0x2067   :  { %1145 = dma.vmem_to_hbm [thread:$0]  %s1141_s27, 128, %s1143_s4, [#allocation4]  }
0x206b   :  { %v1132_v35 = vpop.f32.mrf.mxu0 }
0x206c   :  { %1414 = dma.done.wait [#allocation4], 128  }
0x206d   :  { %1415 = vsyncadd [#allocation4], 4294967168 }
0x206e   :  { %1150 = vsyncpa [#allocation3], 1 }
0x206f   :  { %1151 = vsyncpa [#allocation6], 1 }
0x2070   :  { %1152 = vsyncpa [#allocation4], 1 }

</bundles_post_ra>
